<compile_context>
chip_gen: v7x
topology: tpu7x:2x2x1
jax: 0.10.0
libtpu: 0.0.40
codegen_flags: <defaults>
</compile_context>

<pallas_src>
import jax
import jax.numpy as jnp
from jax.experimental import pallas as pl
from jax.experimental.pallas import tpu as pltpu


def _layernorm(x, gamma, beta, eps=1e-5):
    mu = jnp.mean(x, axis=-1, keepdims=True)
    var = jnp.mean(jnp.square(x - mu), axis=-1, keepdims=True)
    return (x - mu) * jax.lax.rsqrt(var + eps) * gamma + beta


def _gelu(x):
    # TODO(synk): PyTorch nn.GELU() defaults to the exact erf formulation; the tanh
    # approximation is used for guaranteed Mosaic lowering (EUP tanh). The in-file
    # reference uses the same approximation.
    return jax.nn.gelu(x, approximate=True)


def abmil_kernel(
    x_ref,                              # (Bt, Nt, D)  patch tile of a bag block
    w1_ref, b1_ref, g1_ref, be1_ref,    # pre_attn layer 1 (Linear + LayerNorm)
    w2_ref, b2_ref, g2_ref, be2_ref,    # pre_attn layer 2 (Linear + LayerNorm)
    wa_ref, ba_ref,                     # attention_a Linear (H, H)
    wb_ref, bb_ref,                     # attention_b Linear (H, H)
    wct_ref, bc_ref,                    # attention_c weight as (1, H) row + (1, 1) bias
    wp_ref, bp_ref,                     # ProjHead Linear (H, C)
    out_ref,                            # (Bt, C) logits block
    m_sc, l_sc, acc_sc,                 # online-softmax scratch (Bt,1),(Bt,1),(Bt,H) f32
):
    Bt, Nt, D = x_ref.shape
    H = w1_ref.shape[1]
    j = pl.program_id(1)

    @pl.when(j == 0)
    def _():
        m_sc[...] = jnp.full_like(m_sc, -jnp.inf)
        l_sc[...] = jnp.zeros_like(l_sc)
        acc_sc[...] = jnp.zeros_like(acc_sc)

    # Flatten (bag, patch) into the MXU M-dimension. Free view when Nt % 8 == 0
    # (asserted in the wrapper); at production sizes keep D a multiple of 128 too.
    x = x_ref[...].reshape(Bt * Nt, D)

    def _linear(v, w_ref, b_ref):
        # Activations cast to the weight dtype (bf16 path on v6e/v7x); f32 accumulate.
        return jnp.dot(v.astype(w_ref.dtype), w_ref[...],
                       preferred_element_type=jnp.float32) + b_ref[...]

    # --- pre-attention MLP (dropout is identity in eval mode) ---
    h = _gelu(_layernorm(_linear(x, w1_ref, b1_ref), g1_ref[...], be1_ref[...]))
    emb = _gelu(_layernorm(_linear(h, w2_ref, b2_ref), g2_ref[...], be2_ref[...]))
    # emb: (Bt*Nt, H) f32

    # --- gated ABMIL attention scores (two (H,H) dots; fuse only when H % 128 == 0) ---
    a = jnp.tanh(_linear(emb, wa_ref, ba_ref))
    g = jax.nn.sigmoid(_linear(emb, wb_ref, bb_ref))
    ag = (a * g).reshape(Bt, Nt, H)

    # attention_c (H -> 1) as a VPU multiply + lane reduction (no 1-lane MXU output);
    # scores land lane-major as (Bt, Nt).
    scores = jnp.sum(ag * wct_ref[...], axis=-1) + bc_ref[...]          # (Bt, Nt)

    # --- online softmax over the patch axis (PyTorch softmax dim=1) ---
    m_prev = m_sc[...]
    m_new = jnp.maximum(m_prev, jnp.max(scores, axis=-1, keepdims=True))
    alpha = jnp.exp(m_prev - m_new)                                     # (Bt, 1)
    p = jnp.exp(scores - m_new)                                         # (Bt, Nt)
    l_sc[...] = alpha * l_sc[...] + jnp.sum(p, axis=-1, keepdims=True)

    # Weighted patch aggregation for this tile: partial[b] = p[b] @ emb[b].
    # NOTE: M=1 batched matmul; if bundle dumps show MXU drain bubbles, swap for a
    # VPU multiply + sublane accumulate — it is tiny next to the pre-attn MLP FLOPs.
    emb3 = emb.reshape(Bt, Nt, H)
    partial = jnp.einsum('bqn,bnh->bqh', p[:, None, :], emb3,
                         preferred_element_type=jnp.float32).reshape(Bt, H)
    acc_sc[...] = alpha * acc_sc[...] + partial
    m_sc[...] = m_new

    # --- finalize: normalize, projection head, full-block store ---
    @pl.when(j == pl.num_programs(1) - 1)
    def _():
        # approx=True would push the divide to the EUP; exact kept for f32 parity
        # (finalize runs once per bag block, so it is off the hot path anyway).
        slide = acc_sc[...] * pl.reciprocal(l_sc[...], approx=False)
        logits = _linear(slide, wp_ref, bp_ref)
        out_ref[...] = logits.astype(out_ref.dtype)


def abmil_classifier_forward(bags, params, *, block_bags=None, block_n=None,
                             param_dtype=None, single_buffer_weights=False):
    B, N, D = bags.shape
    H = params["w1"].shape[1]
    C = params["wp"].shape[1]

    # Bag-block size. >=2 blocks on the "parallel" axis lets v7x shard across its two
    # TensorCores; on v5e/v6e (1 TC) extra steps are pure overhead, so only split when
    # every block stays a multiple of 8 (output block-shape (8,128) rule).
    if block_bags is None:
        block_bags = B // 2 if (B % 16 == 0) else B
    assert B % block_bags == 0, "block_bags must divide the batch"
    assert block_bags == B or block_bags % 8 == 0, \
        "block_bags must be B or a multiple of 8"

    # Patch-tile size (last grid axis, online-softmax accumulation over it).
    if block_n is None:
        block_n = N
        for cand in (2048, 1024, 512):       # keep the x/emb slabs VMEM-friendly
            if N > cand and N % cand == 0:
                block_n = cand
                break
    assert N % block_n == 0, "block_n must divide N (ragged tails are not masked)"
    assert block_n == N or block_n % 8 == 0, \
        "block_n must be a multiple of 8 so the (Bt,Nt)->(Bt*Nt) flatten is a free view"

    # Optional bf16 streaming of bags + matmul weights (recommended on v6e/v7x).
    if param_dtype is not None:
        bags = bags.astype(param_dtype)
        cast = lambda arr: arr.astype(param_dtype)
    else:
        cast = lambda arr: arr

    wct = params["wc"].T                     # (1, H) row for the VPU score reduction
    bc = params["bc"]                        # (1, 1)

    consts = [cast(params["w1"]), params["b1"], params["g1"], params["be1"],
              cast(params["w2"]), params["b2"], params["g2"], params["be2"],
              cast(params["wa"]), params["ba"],
              cast(params["wb"]), params["bb"],
              wct, bc,
              cast(params["wp"]), params["bp"]]

    def const_spec(arr):
        nd = arr.ndim
        kwargs = {}
        if single_buffer_weights:
            # Constant index_map => double-buffering buys nothing; reclaim ~1x the
            # weight footprint of VMEM at production H (>= 1024). Off in the demo.
            kwargs["pipeline_mode"] = pl.Buffered(1)
        return pl.BlockSpec(arr.shape, lambda i, j, _nd=nd: (0,) * _nd, **kwargs)

    in_specs = [pl.BlockSpec((block_bags, block_n, D), lambda i, j: (i, j, 0))]
    in_specs += [const_spec(a) for a in consts]

    # VMEM budget with headroom, sized against v7x's 64 MiB physical ceiling.
    x_itemsize = jnp.dtype(bags.dtype).itemsize
    const_bytes = sum(int(a.size) * jnp.dtype(a.dtype).itemsize for a in consts)
    act_bytes = 8 * block_bags * block_n * max(H, D) * 4       # h/emb/a/g/ag/p slabs
    est = (2 * block_bags * block_n * D * x_itemsize                    # x (2x buffered)
           + (1 if single_buffer_weights else 2) * const_bytes          # weights
           + act_bytes
           + block_bags * (H + 2 + 2 * C) * 4)                          # scratch + out
    vmem_limit = int(min(max(2 * est, 32 * 1024 * 1024), 64 * 1024 * 1024))

    grid = (B // block_bags, N // block_n)
    return pl.pallas_call(
        abmil_kernel,
        out_shape=jax.ShapeDtypeStruct((B, C), jnp.float32),
        grid=grid,
        in_specs=in_specs,
        # Full (Bt, C) block, constant over the patch axis -> resident accumulator.
        out_specs=pl.BlockSpec((block_bags, C), lambda i, j: (i, 0)),
        scratch_shapes=[pltpu.VMEM((block_bags, 1), jnp.float32),   # m (running max)
                        pltpu.VMEM((block_bags, 1), jnp.float32),   # l (running denom)
                        pltpu.VMEM((block_bags, H), jnp.float32)],  # acc (weighted sum)
        compiler_params=pltpu.CompilerParams(
            dimension_semantics=("parallel", "arbitrary"),
            vmem_limit_bytes=vmem_limit),
    )(bags, *consts)


def init_params(key, input_dim, hidden_dim, num_classes):
    ks = jax.random.split(key, 6)
    scale = 0.05

    def linear(k, din, dout):
        kw, kb = jax.random.split(k)
        w = jax.random.normal(kw, (din, dout), jnp.float32) * scale
        b = jax.random.normal(kb, (1, dout), jnp.float32) * scale
        return w, b

    w1, b1 = linear(ks[0], input_dim, hidden_dim)
    w2, b2 = linear(ks[1], hidden_dim, hidden_dim)
    wa, ba = linear(ks[2], hidden_dim, hidden_dim)
    wb, bb = linear(ks[3], hidden_dim, hidden_dim)
    wc, bc = linear(ks[4], hidden_dim, 1)
    wp, bp = linear(ks[5], hidden_dim, num_classes)
    return dict(
        w1=w1, b1=b1, g1=jnp.ones((1, hidden_dim), jnp.float32),
        be1=jnp.zeros((1, hidden_dim), jnp.float32),
        w2=w2, b2=b2, g2=jnp.ones((1, hidden_dim), jnp.float32),
        be2=jnp.zeros((1, hidden_dim), jnp.float32),
        wa=wa, ba=ba, wb=wb, bb=bb, wc=wc, bc=bc, wp=wp, bp=bp,
    )


def reference_forward(bags, p):
    """Pure-JAX reference (same eval-mode semantics) for a sanity check."""
    h = bags @ p["w1"] + p["b1"]
    h = _gelu(_layernorm(h, p["g1"], p["be1"]))
    h = h @ p["w2"] + p["b2"]
    emb = _gelu(_layernorm(h, p["g2"], p["be2"]))
    a = jnp.tanh(emb @ p["wa"] + p["ba"])
    g = jax.nn.sigmoid(emb @ p["wb"] + p["bb"])
    A = (a * g) @ p["wc"] + p["bc"]
    attn = jax.nn.softmax(A, axis=1)
    slide = jnp.sum(emb * attn, axis=1)
    return slide @ p["wp"] + p["bp"]


if __name__ == "__main__":
    # config = {'hidden_dim': 32, 'activation': 'softmax'}, input_dim = 32, num_classes = 4
    # N=16 with block_n=8 exercises the online-softmax accumulation across 2 patch tiles.
    B, N, D, H, C = 2, 16, 32, 32, 4

    key = jax.random.PRNGKey(0)
    k_x, k_p = jax.random.split(key)
    bags = jax.random.normal(k_x, (B, N, D), jnp.float32)
    params = init_params(k_p, D, H, C)

    logits = abmil_classifier_forward(bags, params, block_n=8)
    logits = jax.block_until_ready(logits)

    ref = reference_forward(bags, params)
    assert logits.shape == (B, C)
    assert jnp.allclose(logits, ref, atol=1e-4, rtol=1e-4), (logits, ref)

    print("KERNEL_OK")
</pallas_src>

<mosaic_0001>
module attributes {stable_mosaic.version = 11 : i64} {
  func.func @abmil_kernel(%arg0: i32, %arg1: i32, %arg2: memref<2x8x32xf32, #tpu.memory_space<vmem>>, %arg3: memref<32x32xf32, #tpu.memory_space<vmem>>, %arg4: memref<1x32xf32, #tpu.memory_space<vmem>>, %arg5: memref<1x32xf32, #tpu.memory_space<vmem>>, %arg6: memref<1x32xf32, #tpu.memory_space<vmem>>, %arg7: memref<32x32xf32, #tpu.memory_space<vmem>>, %arg8: memref<1x32xf32, #tpu.memory_space<vmem>>, %arg9: memref<1x32xf32, #tpu.memory_space<vmem>>, %arg10: memref<1x32xf32, #tpu.memory_space<vmem>>, %arg11: memref<32x32xf32, #tpu.memory_space<vmem>>, %arg12: memref<1x32xf32, #tpu.memory_space<vmem>>, %arg13: memref<32x32xf32, #tpu.memory_space<vmem>>, %arg14: memref<1x32xf32, #tpu.memory_space<vmem>>, %arg15: memref<1x32xf32, #tpu.memory_space<vmem>>, %arg16: memref<1x1xf32, #tpu.memory_space<vmem>>, %arg17: memref<32x4xf32, #tpu.memory_space<vmem>>, %arg18: memref<1x4xf32, #tpu.memory_space<vmem>>, %arg19: memref<2x4xf32, #tpu.memory_space<vmem>>, %arg20: memref<2x1xf32, #tpu.memory_space<vmem>>, %arg21: memref<2x1xf32, #tpu.memory_space<vmem>>, %arg22: memref<2x32xf32, #tpu.memory_space<vmem>>) attributes {dimension_semantics = [#tpu.dimension_semantics<parallel>, #tpu.dimension_semantics<arbitrary>], iteration_bounds = array<i64: 1, 2>, scalar_prefetch = 0 : i64, scratch_operands = 3 : i64, tpu.core_type = #tpu.core_type<tc>, window_params = [{transform_indices = @transform_0, window_bounds = array<i64: 2, 8, 32>}, {pipeline_mode = #tpu.pipeline_mode<synchronous>, transform_indices = @transform_1, window_bounds = array<i64: 32, 32>}, {pipeline_mode = #tpu.pipeline_mode<synchronous>, transform_indices = @transform_2, window_bounds = array<i64: 1, 32>}, {pipeline_mode = #tpu.pipeline_mode<synchronous>, transform_indices = @transform_3, window_bounds = array<i64: 1, 32>}, {pipeline_mode = #tpu.pipeline_mode<synchronous>, transform_indices = @transform_4, window_bounds = array<i64: 1, 32>}, {pipeline_mode = #tpu.pipeline_mode<synchronous>, transform_indices = @transform_5, window_bounds = array<i64: 32, 32>}, {pipeline_mode = #tpu.pipeline_mode<synchronous>, transform_indices = @transform_6, window_bounds = array<i64: 1, 32>}, {pipeline_mode = #tpu.pipeline_mode<synchronous>, transform_indices = @transform_7, window_bounds = array<i64: 1, 32>}, {pipeline_mode = #tpu.pipeline_mode<synchronous>, transform_indices = @transform_8, window_bounds = array<i64: 1, 32>}, {pipeline_mode = #tpu.pipeline_mode<synchronous>, transform_indices = @transform_9, window_bounds = array<i64: 32, 32>}, {pipeline_mode = #tpu.pipeline_mode<synchronous>, transform_indices = @transform_10, window_bounds = array<i64: 1, 32>}, {pipeline_mode = #tpu.pipeline_mode<synchronous>, transform_indices = @transform_11, window_bounds = array<i64: 32, 32>}, {pipeline_mode = #tpu.pipeline_mode<synchronous>, transform_indices = @transform_12, window_bounds = array<i64: 1, 32>}, {pipeline_mode = #tpu.pipeline_mode<synchronous>, transform_indices = @transform_13, window_bounds = array<i64: 1, 32>}, {pipeline_mode = #tpu.pipeline_mode<synchronous>, transform_indices = @transform_14, window_bounds = array<i64: 1, 1>}, {pipeline_mode = #tpu.pipeline_mode<synchronous>, transform_indices = @transform_15, window_bounds = array<i64: 32, 4>}, {pipeline_mode = #tpu.pipeline_mode<synchronous>, transform_indices = @transform_16, window_bounds = array<i64: 1, 4>}, {transform_indices = @transform_17, window_bounds = array<i64: 2, 4>}]} {
    %c0_i32 = arith.constant 0 : i32
    %0 = arith.cmpi eq, %arg1, %c0_i32 : i32
    %1 = arith.extui %0 : i1 to i32
    %c0_i32_0 = arith.constant 0 : i32
    %2 = arith.cmpi ne, %1, %c0_i32_0 : i32
    scf.if %2 {
      %cst_70 = arith.constant 0xFF800000 : f32
      %143 = vector.broadcast %cst_70 : f32 to vector<2x1xf32>
      %c0_71 = arith.constant 0 : index
      %c0_72 = arith.constant 0 : index
      %144 = vector.load %arg20[%c0_71, %c0_72] : memref<2x1xf32, #tpu.memory_space<vmem>>, vector<2x1xf32>
      tpu.vector_store %arg20[%c0_71, %c0_72], %143 {strides = array<i32>} : memref<2x1xf32, #tpu.memory_space<vmem>>, vector<2x1xf32>,
      %cst_73 = arith.constant 0.000000e+00 : f32
      %145 = vector.broadcast %cst_73 : f32 to vector<2x1xf32>
      %c0_74 = arith.constant 0 : index
      %c0_75 = arith.constant 0 : index
      %146 = vector.load %arg21[%c0_74, %c0_75] : memref<2x1xf32, #tpu.memory_space<vmem>>, vector<2x1xf32>
      tpu.vector_store %arg21[%c0_74, %c0_75], %145 {strides = array<i32>} : memref<2x1xf32, #tpu.memory_space<vmem>>, vector<2x1xf32>,
      %cst_76 = arith.constant 0.000000e+00 : f32
      %147 = vector.broadcast %cst_76 : f32 to vector<2x32xf32>
      %c0_77 = arith.constant 0 : index
      %c0_78 = arith.constant 0 : index
      %148 = vector.load %arg22[%c0_77, %c0_78] : memref<2x32xf32, #tpu.memory_space<vmem>>, vector<2x32xf32>
      tpu.vector_store %arg22[%c0_77, %c0_78], %147 {strides = array<i32>} : memref<2x32xf32, #tpu.memory_space<vmem>>, vector<2x32xf32>,
    } else {
    }
    %c0 = arith.constant 0 : index
    %c0_1 = arith.constant 0 : index
    %c0_2 = arith.constant 0 : index
    %3 = vector.load %arg2[%c0, %c0_1, %c0_2] : memref<2x8x32xf32, #tpu.memory_space<vmem>>, vector<2x8x32xf32>
    %4 = vector.shape_cast %3 : vector<2x8x32xf32> to vector<16x32xf32>
    %c0_3 = arith.constant 0 : index
    %c0_4 = arith.constant 0 : index
    %5 = vector.load %arg3[%c0_3, %c0_4] : memref<32x32xf32, #tpu.memory_space<vmem>>, vector<32x32xf32>
    %cst = arith.constant dense<0.000000e+00> : vector<16x32xf32>
    %6 = tpu.matmul %4, %5, %cst {dimension_numbers = #tpu.dot_dimension_numbers<[1], [0], [0], [1], [0, 0, 1, 1], [], []>} : vector<16x32xf32>, vector<32x32xf32>, vector<16x32xf32> -> vector<16x32xf32>
    %c0_5 = arith.constant 0 : index
    %c0_6 = arith.constant 0 : index
    %7 = vector.load %arg4[%c0_5, %c0_6] : memref<1x32xf32, #tpu.memory_space<vmem>>, vector<1x32xf32>
    %8 = vector.broadcast %7 : vector<1x32xf32> to vector<16x32xf32>
    %9 = arith.addf %6, %8 : vector<16x32xf32>
    %c0_7 = arith.constant 0 : index
    %c0_8 = arith.constant 0 : index
    %10 = vector.load %arg5[%c0_7, %c0_8] : memref<1x32xf32, #tpu.memory_space<vmem>>, vector<1x32xf32>
    %c0_9 = arith.constant 0 : index
    %c0_10 = arith.constant 0 : index
    %11 = vector.load %arg6[%c0_9, %c0_10] : memref<1x32xf32, #tpu.memory_space<vmem>>, vector<1x32xf32>
    %cst_11 = arith.constant dense<0.000000e+00> : vector<16xf32>
    %12 = vector.multi_reduction <add>, %9, %cst_11 [1] : vector<16x32xf32> to vector<16xf32>
    %13 = vector.shape_cast %12 : vector<16xf32> to vector<16x1xf32>
    %cst_12 = arith.constant 3.200000e+01 : f32
    %14 = vector.broadcast %cst_12 : f32 to vector<16x1xf32>
    %15 = arith.divf %13, %14 : vector<16x1xf32>
    %16 = vector.broadcast %15 : vector<16x1xf32> to vector<16x32xf32>
    %17 = arith.subf %9, %16 : vector<16x32xf32>
    %18 = arith.mulf %17, %17 : vector<16x32xf32>
    %cst_13 = arith.constant dense<0.000000e+00> : vector<16xf32>
    %19 = vector.multi_reduction <add>, %18, %cst_13 [1] : vector<16x32xf32> to vector<16xf32>
    %20 = vector.shape_cast %19 : vector<16xf32> to vector<16x1xf32>
    %cst_14 = arith.constant 3.200000e+01 : f32
    %21 = vector.broadcast %cst_14 : f32 to vector<16x1xf32>
    %22 = arith.divf %20, %21 : vector<16x1xf32>
    %23 = vector.broadcast %15 : vector<16x1xf32> to vector<16x32xf32>
    %24 = arith.subf %9, %23 : vector<16x32xf32>
    %cst_15 = arith.constant 9.99999974E-6 : f32
    %25 = vector.broadcast %cst_15 : f32 to vector<16x1xf32>
    %26 = arith.addf %22, %25 : vector<16x1xf32>
    %27 = math.rsqrt %26 : vector<16x1xf32>
    %28 = vector.broadcast %27 : vector<16x1xf32> to vector<16x32xf32>
    %29 = arith.mulf %24, %28 : vector<16x32xf32>
    %30 = vector.broadcast %10 : vector<1x32xf32> to vector<16x32xf32>
    %31 = arith.mulf %29, %30 : vector<16x32xf32>
    %32 = vector.broadcast %11 : vector<1x32xf32> to vector<16x32xf32>
    %33 = arith.addf %31, %32 : vector<16x32xf32>
    %34 = arith.mulf %33, %33 : vector<16x32xf32>
    %35 = arith.mulf %33, %34 : vector<16x32xf32>
    %cst_16 = arith.constant 4.471500e-02 : f32
    %36 = vector.broadcast %cst_16 : f32 to vector<16x32xf32>
    %37 = arith.mulf %36, %35 : vector<16x32xf32>
    %38 = arith.addf %33, %37 : vector<16x32xf32>
    %cst_17 = arith.constant 0.797884583 : f32
    %39 = vector.broadcast %cst_17 : f32 to vector<16x32xf32>
    %40 = arith.mulf %39, %38 : vector<16x32xf32>
    %41 = math.tanh %40 : vector<16x32xf32>
    %cst_18 = arith.constant 1.000000e+00 : f32
    %42 = vector.broadcast %cst_18 : f32 to vector<16x32xf32>
    %43 = arith.addf %42, %41 : vector<16x32xf32>
    %cst_19 = arith.constant 5.000000e-01 : f32
    %44 = vector.broadcast %cst_19 : f32 to vector<16x32xf32>
    %45 = arith.mulf %44, %43 : vector<16x32xf32>
    %46 = arith.mulf %33, %45 : vector<16x32xf32>
    %c0_20 = arith.constant 0 : index
    %c0_21 = arith.constant 0 : index
    %47 = vector.load %arg7[%c0_20, %c0_21] : memref<32x32xf32, #tpu.memory_space<vmem>>, vector<32x32xf32>
    %cst_22 = arith.constant dense<0.000000e+00> : vector<16x32xf32>
    %48 = tpu.matmul %46, %47, %cst_22 {dimension_numbers = #tpu.dot_dimension_numbers<[1], [0], [0], [1], [0, 0, 1, 1], [], []>} : vector<16x32xf32>, vector<32x32xf32>, vector<16x32xf32> -> vector<16x32xf32>
    %c0_23 = arith.constant 0 : index
    %c0_24 = arith.constant 0 : index
    %49 = vector.load %arg8[%c0_23, %c0_24] : memref<1x32xf32, #tpu.memory_space<vmem>>, vector<1x32xf32>
    %50 = vector.broadcast %49 : vector<1x32xf32> to vector<16x32xf32>
    %51 = arith.addf %48, %50 : vector<16x32xf32>
    %c0_25 = arith.constant 0 : index
    %c0_26 = arith.constant 0 : index
    %52 = vector.load %arg9[%c0_25, %c0_26] : memref<1x32xf32, #tpu.memory_space<vmem>>, vector<1x32xf32>
    %c0_27 = arith.constant 0 : index
    %c0_28 = arith.constant 0 : index
    %53 = vector.load %arg10[%c0_27, %c0_28] : memref<1x32xf32, #tpu.memory_space<vmem>>, vector<1x32xf32>
    %cst_29 = arith.constant dense<0.000000e+00> : vector<16xf32>
    %54 = vector.multi_reduction <add>, %51, %cst_29 [1] : vector<16x32xf32> to vector<16xf32>
    %55 = vector.shape_cast %54 : vector<16xf32> to vector<16x1xf32>
    %cst_30 = arith.constant 3.200000e+01 : f32
    %56 = vector.broadcast %cst_30 : f32 to vector<16x1xf32>
    %57 = arith.divf %55, %56 : vector<16x1xf32>
    %58 = vector.broadcast %57 : vector<16x1xf32> to vector<16x32xf32>
    %59 = arith.subf %51, %58 : vector<16x32xf32>
    %60 = arith.mulf %59, %59 : vector<16x32xf32>
    %cst_31 = arith.constant dense<0.000000e+00> : vector<16xf32>
    %61 = vector.multi_reduction <add>, %60, %cst_31 [1] : vector<16x32xf32> to vector<16xf32>
    %62 = vector.shape_cast %61 : vector<16xf32> to vector<16x1xf32>
    %cst_32 = arith.constant 3.200000e+01 : f32
    %63 = vector.broadcast %cst_32 : f32 to vector<16x1xf32>
    %64 = arith.divf %62, %63 : vector<16x1xf32>
    %65 = vector.broadcast %57 : vector<16x1xf32> to vector<16x32xf32>
    %66 = arith.subf %51, %65 : vector<16x32xf32>
    %cst_33 = arith.constant 9.99999974E-6 : f32
    %67 = vector.broadcast %cst_33 : f32 to vector<16x1xf32>
    %68 = arith.addf %64, %67 : vector<16x1xf32>
    %69 = math.rsqrt %68 : vector<16x1xf32>
    %70 = vector.broadcast %69 : vector<16x1xf32> to vector<16x32xf32>
    %71 = arith.mulf %66, %70 : vector<16x32xf32>
    %72 = vector.broadcast %52 : vector<1x32xf32> to vector<16x32xf32>
    %73 = arith.mulf %71, %72 : vector<16x32xf32>
    %74 = vector.broadcast %53 : vector<1x32xf32> to vector<16x32xf32>
    %75 = arith.addf %73, %74 : vector<16x32xf32>
    %76 = arith.mulf %75, %75 : vector<16x32xf32>
    %77 = arith.mulf %75, %76 : vector<16x32xf32>
    %cst_34 = arith.constant 4.471500e-02 : f32
    %78 = vector.broadcast %cst_34 : f32 to vector<16x32xf32>
    %79 = arith.mulf %78, %77 : vector<16x32xf32>
    %80 = arith.addf %75, %79 : vector<16x32xf32>
    %cst_35 = arith.constant 0.797884583 : f32
    %81 = vector.broadcast %cst_35 : f32 to vector<16x32xf32>
    %82 = arith.mulf %81, %80 : vector<16x32xf32>
    %83 = math.tanh %82 : vector<16x32xf32>
    %cst_36 = arith.constant 1.000000e+00 : f32
    %84 = vector.broadcast %cst_36 : f32 to vector<16x32xf32>
    %85 = arith.addf %84, %83 : vector<16x32xf32>
    %cst_37 = arith.constant 5.000000e-01 : f32
    %86 = vector.broadcast %cst_37 : f32 to vector<16x32xf32>
    %87 = arith.mulf %86, %85 : vector<16x32xf32>
    %88 = arith.mulf %75, %87 : vector<16x32xf32>
    %c0_38 = arith.constant 0 : index
    %c0_39 = arith.constant 0 : index
    %89 = vector.load %arg11[%c0_38, %c0_39] : memref<32x32xf32, #tpu.memory_space<vmem>>, vector<32x32xf32>
    %cst_40 = arith.constant dense<0.000000e+00> : vector<16x32xf32>
    %90 = tpu.matmul %88, %89, %cst_40 {dimension_numbers = #tpu.dot_dimension_numbers<[1], [0], [0], [1], [0, 0, 1, 1], [], []>} : vector<16x32xf32>, vector<32x32xf32>, vector<16x32xf32> -> vector<16x32xf32>
    %c0_41 = arith.constant 0 : index
    %c0_42 = arith.constant 0 : index
    %91 = vector.load %arg12[%c0_41, %c0_42] : memref<1x32xf32, #tpu.memory_space<vmem>>, vector<1x32xf32>
    %92 = vector.broadcast %91 : vector<1x32xf32> to vector<16x32xf32>
    %93 = arith.addf %90, %92 : vector<16x32xf32>
    %94 = math.tanh %93 : vector<16x32xf32>
    %c0_43 = arith.constant 0 : index
    %c0_44 = arith.constant 0 : index
    %95 = vector.load %arg13[%c0_43, %c0_44] : memref<32x32xf32, #tpu.memory_space<vmem>>, vector<32x32xf32>
    %cst_45 = arith.constant dense<0.000000e+00> : vector<16x32xf32>
    %96 = tpu.matmul %88, %95, %cst_45 {dimension_numbers = #tpu.dot_dimension_numbers<[1], [0], [0], [1], [0, 0, 1, 1], [], []>} : vector<16x32xf32>, vector<32x32xf32>, vector<16x32xf32> -> vector<16x32xf32>
    %c0_46 = arith.constant 0 : index
    %c0_47 = arith.constant 0 : index
    %97 = vector.load %arg14[%c0_46, %c0_47] : memref<1x32xf32, #tpu.memory_space<vmem>>, vector<1x32xf32>
    %98 = vector.broadcast %97 : vector<1x32xf32> to vector<16x32xf32>
    %99 = arith.addf %96, %98 : vector<16x32xf32>
    %100 = arith.negf %99 : vector<16x32xf32>
    %101 = math.exp %100 : vector<16x32xf32>
    %cst_48 = arith.constant 1.000000e+00 : f32
    %102 = vector.broadcast %cst_48 : f32 to vector<16x32xf32>
    %103 = arith.addf %102, %101 : vector<16x32xf32>
    %104 = arith.divf %102, %103 : vector<16x32xf32>
    %105 = arith.mulf %94, %104 : vector<16x32xf32>
    %106 = vector.shape_cast %105 : vector<16x32xf32> to vector<2x8x32xf32>
    %c0_49 = arith.constant 0 : index
    %c0_50 = arith.constant 0 : index
    %107 = vector.load %arg15[%c0_49, %c0_50] : memref<1x32xf32, #tpu.memory_space<vmem>>, vector<1x32xf32>
    %108 = vector.shape_cast %107 : vector<1x32xf32> to vector<1x1x32xf32>
    %109 = vector.broadcast %108 : vector<1x1x32xf32> to vector<2x8x32xf32>
    %110 = arith.mulf %106, %109 : vector<2x8x32xf32>
    %cst_51 = arith.constant dense<0.000000e+00> : vector<2x8xf32>
    %111 = vector.multi_reduction <add>, %110, %cst_51 [2] : vector<2x8x32xf32> to vector<2x8xf32>
    %c0_52 = arith.constant 0 : index
    %c0_53 = arith.constant 0 : index
    %112 = vector.load %arg16[%c0_52, %c0_53] : memref<1x1xf32, #tpu.memory_space<vmem>>, vector<1x1xf32>
    %113 = vector.broadcast %112 : vector<1x1xf32> to vector<2x8xf32>
    %114 = arith.addf %111, %113 : vector<2x8xf32>
    %c0_54 = arith.constant 0 : index
    %c0_55 = arith.constant 0 : index
    %115 = vector.load %arg20[%c0_54, %c0_55] : memref<2x1xf32, #tpu.memory_space<vmem>>, vector<2x1xf32>
    %cst_56 = arith.constant dense<0xFF800000> : vector<2xf32>
    %116 = vector.multi_reduction <maximumf>, %114, %cst_56 [1] : vector<2x8xf32> to vector<2xf32>
    %117 = vector.shape_cast %116 : vector<2xf32> to vector<2x1xf32>
    %118 = arith.maximumf %115, %117 : vector<2x1xf32>
    %119 = arith.subf %115, %118 : vector<2x1xf32>
    %120 = math.exp %119 : vector<2x1xf32>
    %121 = vector.broadcast %118 : vector<2x1xf32> to vector<2x8xf32>
    %122 = arith.subf %114, %121 : vector<2x8xf32>
    %123 = math.exp %122 : vector<2x8xf32>
    %c0_57 = arith.constant 0 : index
    %c0_58 = arith.constant 0 : index
    %124 = vector.load %arg21[%c0_57, %c0_58] : memref<2x1xf32, #tpu.memory_space<vmem>>, vector<2x1xf32>
    %125 = arith.mulf %120, %124 : vector<2x1xf32>
    %cst_59 = arith.constant dense<0.000000e+00> : vector<2xf32>
    %126 = vector.multi_reduction <add>, %123, %cst_59 [1] : vector<2x8xf32> to vector<2xf32>
    %127 = vector.shape_cast %126 : vector<2xf32> to vector<2x1xf32>
    %128 = arith.addf %125, %127 : vector<2x1xf32>
    %c0_60 = arith.constant 0 : index
    %c0_61 = arith.constant 0 : index
    %129 = vector.load %arg21[%c0_60, %c0_61] : memref<2x1xf32, #tpu.memory_space<vmem>>, vector<2x1xf32>
    tpu.vector_store %arg21[%c0_60, %c0_61], %128 {strides = array<i32>} : memref<2x1xf32, #tpu.memory_space<vmem>>, vector<2x1xf32>,
    %130 = vector.shape_cast %88 : vector<16x32xf32> to vector<2x8x32xf32>
    %131 = vector.shape_cast %123 : vector<2x8xf32> to vector<2x1x8xf32>
    "tpu.trace_start"() <{level = 10 : i32, message = "bqn,bnh->bqh"}> : () -> ()
    %cst_62 = arith.constant dense<0.000000e+00> : vector<2x1x32xf32>
    %132 = tpu.matmul %131, %130, %cst_62 {dimension_numbers = #tpu.dot_dimension_numbers<[2], [1], [1], [2], [0, 0, 0, 1, 1, 2], [0], [0]>} : vector<2x1x8xf32>, vector<2x8x32xf32>, vector<2x1x32xf32> -> vector<2x1x32xf32>
    "tpu.trace_stop"() : () -> ()
    %133 = vector.shape_cast %132 : vector<2x1x32xf32> to vector<2x32xf32>
    %c0_63 = arith.constant 0 : index
    %c0_64 = arith.constant 0 : index
    %134 = vector.load %arg22[%c0_63, %c0_64] : memref<2x32xf32, #tpu.memory_space<vmem>>, vector<2x32xf32>
    %135 = vector.broadcast %120 : vector<2x1xf32> to vector<2x32xf32>
    %136 = arith.mulf %135, %134 : vector<2x32xf32>
    %137 = arith.addf %136, %133 : vector<2x32xf32>
    %c0_65 = arith.constant 0 : index
    %c0_66 = arith.constant 0 : index
    %138 = vector.load %arg22[%c0_65, %c0_66] : memref<2x32xf32, #tpu.memory_space<vmem>>, vector<2x32xf32>
    tpu.vector_store %arg22[%c0_65, %c0_66], %137 {strides = array<i32>} : memref<2x32xf32, #tpu.memory_space<vmem>>, vector<2x32xf32>,
    %c0_67 = arith.constant 0 : index
    %c0_68 = arith.constant 0 : index
    %139 = vector.load %arg20[%c0_67, %c0_68] : memref<2x1xf32, #tpu.memory_space<vmem>>, vector<2x1xf32>
    tpu.vector_store %arg20[%c0_67, %c0_68], %118 {strides = array<i32>} : memref<2x1xf32, #tpu.memory_space<vmem>>, vector<2x1xf32>,
    %c1_i32 = arith.constant 1 : i32
    %140 = arith.cmpi eq, %arg1, %c1_i32 : i32
    %141 = arith.extui %140 : i1 to i32
    %c0_i32_69 = arith.constant 0 : i32
    %142 = arith.cmpi ne, %141, %c0_i32_69 : i32
    scf.if %142 {
      %c0_70 = arith.constant 0 : index
      %c0_71 = arith.constant 0 : index
      %143 = vector.load %arg22[%c0_70, %c0_71] : memref<2x32xf32, #tpu.memory_space<vmem>>, vector<2x32xf32>
      %c0_72 = arith.constant 0 : index
      %c0_73 = arith.constant 0 : index
      %144 = vector.load %arg21[%c0_72, %c0_73] : memref<2x1xf32, #tpu.memory_space<vmem>>, vector<2x1xf32>
      %145 = tpu.reciprocal %144 : vector<2x1xf32> -> vector<2x1xf32>
      %146 = vector.broadcast %145 : vector<2x1xf32> to vector<2x32xf32>
      %147 = arith.mulf %143, %146 : vector<2x32xf32>
      %c0_74 = arith.constant 0 : index
      %c0_75 = arith.constant 0 : index
      %148 = vector.load %arg17[%c0_74, %c0_75] : memref<32x4xf32, #tpu.memory_space<vmem>>, vector<32x4xf32>
      %cst_76 = arith.constant dense<0.000000e+00> : vector<2x4xf32>
      %149 = tpu.matmul %147, %148, %cst_76 {dimension_numbers = #tpu.dot_dimension_numbers<[1], [0], [0], [1], [0, 0, 1, 1], [], []>} : vector<2x32xf32>, vector<32x4xf32>, vector<2x4xf32> -> vector<2x4xf32>
      %c0_77 = arith.constant 0 : index
      %c0_78 = arith.constant 0 : index
      %150 = vector.load %arg18[%c0_77, %c0_78] : memref<1x4xf32, #tpu.memory_space<vmem>>, vector<1x4xf32>
      %151 = vector.broadcast %150 : vector<1x4xf32> to vector<2x4xf32>
      %152 = arith.addf %149, %151 : vector<2x4xf32>
      %c0_79 = arith.constant 0 : index
      %c0_80 = arith.constant 0 : index
      %153 = vector.load %arg19[%c0_79, %c0_80] : memref<2x4xf32, #tpu.memory_space<vmem>>, vector<2x4xf32>
      tpu.vector_store %arg19[%c0_79, %c0_80], %152 {strides = array<i32>} : memref<2x4xf32, #tpu.memory_space<vmem>>, vector<2x4xf32>,
    } else {
    }
    return
  }
  func.func @transform_0(%arg0: i32, %arg1: i32) -> (i32, i32, i32) {
    %c0_i32 = arith.constant 0 : i32
    %c0_i32_0 = arith.constant 0 : i32
    return %arg0, %arg1, %c0_i32 : i32, i32, i32
  }
  func.func @transform_1(%arg0: i32, %arg1: i32) -> (i32, i32) {
    %c0_i32 = arith.constant 0 : i32
    %c0_i32_0 = arith.constant 0 : i32
    %c0_i32_1 = arith.constant 0 : i32
    return %c0_i32, %c0_i32_0 : i32, i32
  }
  func.func @transform_2(%arg0: i32, %arg1: i32) -> (i32, i32) {
    %c0_i32 = arith.constant 0 : i32
    %c0_i32_0 = arith.constant 0 : i32
    %c0_i32_1 = arith.constant 0 : i32
    return %c0_i32, %c0_i32_0 : i32, i32
  }
  func.func @transform_3(%arg0: i32, %arg1: i32) -> (i32, i32) {
    %c0_i32 = arith.constant 0 : i32
    %c0_i32_0 = arith.constant 0 : i32
    %c0_i32_1 = arith.constant 0 : i32
    return %c0_i32, %c0_i32_0 : i32, i32
  }
  func.func @transform_4(%arg0: i32, %arg1: i32) -> (i32, i32) {
    %c0_i32 = arith.constant 0 : i32
    %c0_i32_0 = arith.constant 0 : i32
    %c0_i32_1 = arith.constant 0 : i32
    return %c0_i32, %c0_i32_0 : i32, i32
  }
  func.func @transform_5(%arg0: i32, %arg1: i32) -> (i32, i32) {
    %c0_i32 = arith.constant 0 : i32
    %c0_i32_0 = arith.constant 0 : i32
    %c0_i32_1 = arith.constant 0 : i32
    return %c0_i32, %c0_i32_0 : i32, i32
  }
  func.func @transform_6(%arg0: i32, %arg1: i32) -> (i32, i32) {
    %c0_i32 = arith.constant 0 : i32
    %c0_i32_0 = arith.constant 0 : i32
    %c0_i32_1 = arith.constant 0 : i32
    return %c0_i32, %c0_i32_0 : i32, i32
  }
  func.func @transform_7(%arg0: i32, %arg1: i32) -> (i32, i32) {
    %c0_i32 = arith.constant 0 : i32
    %c0_i32_0 = arith.constant 0 : i32
    %c0_i32_1 = arith.constant 0 : i32
    return %c0_i32, %c0_i32_0 : i32, i32
  }
  func.func @transform_8(%arg0: i32, %arg1: i32) -> (i32, i32) {
    %c0_i32 = arith.constant 0 : i32
    %c0_i32_0 = arith.constant 0 : i32
    %c0_i32_1 = arith.constant 0 : i32
    return %c0_i32, %c0_i32_0 : i32, i32
  }
  func.func @transform_9(%arg0: i32, %arg1: i32) -> (i32, i32) {
    %c0_i32 = arith.constant 0 : i32
    %c0_i32_0 = arith.constant 0 : i32
    %c0_i32_1 = arith.constant 0 : i32
    return %c0_i32, %c0_i32_0 : i32, i32
  }
  func.func @transform_10(%arg0: i32, %arg1: i32) -> (i32, i32) {
    %c0_i32 = arith.constant 0 : i32
    %c0_i32_0 = arith.constant 0 : i32
    %c0_i32_1 = arith.constant 0 : i32
    return %c0_i32, %c0_i32_0 : i32, i32
  }
  func.func @transform_11(%arg0: i32, %arg1: i32) -> (i32, i32) {
    %c0_i32 = arith.constant 0 : i32
    %c0_i32_0 = arith.constant 0 : i32
    %c0_i32_1 = arith.constant 0 : i32
    return %c0_i32, %c0_i32_0 : i32, i32
  }
  func.func @transform_12(%arg0: i32, %arg1: i32) -> (i32, i32) {
    %c0_i32 = arith.constant 0 : i32
    %c0_i32_0 = arith.constant 0 : i32
    %c0_i32_1 = arith.constant 0 : i32
    return %c0_i32, %c0_i32_0 : i32, i32
  }
  func.func @transform_13(%arg0: i32, %arg1: i32) -> (i32, i32) {
    %c0_i32 = arith.constant 0 : i32
    %c0_i32_0 = arith.constant 0 : i32
    %c0_i32_1 = arith.constant 0 : i32
    return %c0_i32, %c0_i32_0 : i32, i32
  }
  func.func @transform_14(%arg0: i32, %arg1: i32) -> (i32, i32) {
    %c0_i32 = arith.constant 0 : i32
    %c0_i32_0 = arith.constant 0 : i32
    %c0_i32_1 = arith.constant 0 : i32
    return %c0_i32, %c0_i32_0 : i32, i32
  }
  func.func @transform_15(%arg0: i32, %arg1: i32) -> (i32, i32) {
    %c0_i32 = arith.constant 0 : i32
    %c0_i32_0 = arith.constant 0 : i32
    %c0_i32_1 = arith.constant 0 : i32
    return %c0_i32, %c0_i32_0 : i32, i32
  }
  func.func @transform_16(%arg0: i32, %arg1: i32) -> (i32, i32) {
    %c0_i32 = arith.constant 0 : i32
    %c0_i32_0 = arith.constant 0 : i32
    %c0_i32_1 = arith.constant 0 : i32
    return %c0_i32, %c0_i32_0 : i32, i32
  }
  func.func @transform_17(%arg0: i32, %arg1: i32) -> (i32, i32) {
    %c0_i32 = arith.constant 0 : i32
    %c0_i32_0 = arith.constant 0 : i32
    return %arg0, %c0_i32 : i32, i32
  }
}

</mosaic_0001>

<bundles_post_ra>
// kernel: tpu_custom_call.1
= control target key start
LH: loop header
LB: loop body
LE: loop exit
PB: predicated region body
PF: predicated region fallthrough
CT: control target
= control target key end

     0   :  { %s2811_s0 = inlined_call_operand.vmem [shape: f32[2,16,32], index: 0, kind: input, shape index: {}]   ;;  %s2812_s1 = inlined_call_operand.hbm [shape: f32[32,32], index: 1, kind: input, shape index: {}]   ;;  %s2813_s2 = inlined_call_operand.vmem [shape: f32[1,32], index: 2, kind: input, shape index: {}]   ;;  %s2814_s3 = inlined_call_operand.vmem [shape: f32[1,32], index: 3, kind: input, shape index: {}]   ;;  %s2815_s4 = inlined_call_operand.hbm [shape: f32[1,32], index: 4, kind: input, shape index: {}]   ;;  %s2816_s5 = inlined_call_operand.hbm [shape: f32[32,32], index: 5, kind: input, shape index: {}]   ;;  %s2817_s6 = inlined_call_operand.hbm [shape: f32[1,32], index: 6, kind: input, shape index: {}]   ;;  %s2818_s7 = inlined_call_operand.hbm [shape: f32[1,32], index: 7, kind: input, shape index: {}]   ;;  %s2819_s8 = inlined_call_operand.hbm [shape: f32[1,32], index: 8, kind: input, shape index: {}]   ;;  %s2820_s9 = inlined_call_operand.vmem [shape: f32[32,32], index: 9, kind: input, shape index: {}]   ;;  %s2821_s10 = inlined_call_operand.vmem [shape: f32[1,32], index: 10, kind: input, shape index: {}]   ;;  %s2822_s11 = inlined_call_operand.hbm [shape: f32[32,32], index: 11, kind: input, shape index: {}]   ;;  %s2823_s12 = inlined_call_operand.vmem [shape: f32[1,32], index: 12, kind: input, shape index: {}]   ;;  %s2824_s13 = inlined_call_operand.vmem [shape: f32[1,32], index: 13, kind: input, shape index: {}]   ;;  %s2825_s14 = inlined_call_operand.<no memory space> [shape: f32[1,1], index: 14, kind: input, shape index: {}]   ;;  %s2826_s15 = inlined_call_operand.vmem [shape: f32[32,4], index: 15, kind: input, shape index: {}]   ;;  %s2827_s16 = inlined_call_operand.vmem [shape: f32[1,4], index: 16, kind: input, shape index: {}]   ;;  %s2828_s17 = inlined_call_operand.hbm [shape: f32[2,4], index: 17, kind: output, shape index: {}]  }
   0x1   :  { %2838 = sst [smem:[#allocation27_spill]] %s2811_s0  ;;  %v22_v0 = vstv %s2825_s14 }
   0x2   :  { %2839 = sst [smem:[#allocation28_spill]] %s2812_s1  ;;  %23 = vst [vmem:[#allocation5] sm:$0x1] %v22_v0 }
   0x3   :  { %2840 = sst [smem:[#allocation29_spill]] %s2814_s3 }
   0x4   :  { %2841 = sst [smem:[#allocation30_spill]] %s2815_s4 }
   0x5   :  { %2842 = sst [smem:[#allocation31_spill]] %s2817_s6 }
   0x6   :  { %2843 = sst [smem:[#allocation32_spill]] %s2819_s8 }
   0x7   :  { %2844 = sst [smem:[#allocation33_spill]] %s2820_s9 }
   0x8   :  { %2845 = sst [smem:[#allocation34_spill]] %s2821_s10 }
   0x9   :  { %2846 = sst [smem:[#allocation35_spill]] %s2823_s12 }
   0xa   :  { %2847 = sst [smem:[#allocation36_spill]] %s2824_s13 }
   0xb   :  { %2848 = sst [smem:[#allocation37_spill]] %s2826_s15 }
   0xc   :  { %2849 = sst [smem:[#allocation38_spill]] %s2827_s16 }
   0xd   :  { %2850 = sst [smem:[#allocation39_spill]] %s2828_s17 }
   0xe   :  { %24 = vsyncpa [#allocation8], 0 }
   0xf   :  { %25 = vsyncpa [#allocation11], 0 }
  0x10   :  { %26 = vsyncpa [#allocation14], 0 }
  0x11   :  { %27 = vsyncpa [#allocation17], 0 }
  0x12   :  { %28 = vsyncpa [#allocation9], 0  ;;  %s2449_s26 = smov 0   ;;  %s2451_s27 = smov 0  }
  0x13   :  { %s2453_s28 = smov 0   ;;  %s2455_s29 = smov 0  }
  0x14   :  { %s2457_s0 = smov 0  }
  0x15 LB: > { %s2831_s14 = sadd.s32 4294967295, %s2335_s0   ;;  %s43_s30 = sadd.s32 1, %s2331_s29  ;;  %s2335_s0 = sphi %s2457_s0, %s34_s0   ;;  %s2331_s29 = sphi %s2455_s29, %s2881_s29   ;;  %s2327_s28 = sphi %s2453_s28, %s2880_s28   ;;  %s2323_s27 = sphi %s2451_s27, %s2879_s27   ;;  %s2319_s26 = sphi %s2449_s26, %s2878_s26  }
  0x16   : > { %p44_p0 = scmp.ge.s32.totalorder %s43_s30, 2  ;;  %s55_s18 = sadd.s32 1, %s2323_s27 }
  0x17   : > { %p62_p1 = scmp.ne.s32.totalorder %s2323_s27, %s2319_s26  ;;  %p63_p2 = scmp.eq.s32.totalorder %s2335_s0, 0 }
  0x18   : > { %s2883_s30 = smov (%p44_p0, %s43_s30), 0  ;;  %p1701_p4 = scmp.ge.s32.totalorder %s2335_s0, 1 }
  0x19   : > { %2851 = sst [smem:[#allocation25_spill]] %s2883_s30  ;;  %p2482_p3 = por %p63_p2, %p62_p1 }
  0x1a   : > { %s51_s1 = ssub.s32 %s2331_s29, %s2883_s30  ;;  %p441_p5 = scmp.lt.s32.totalorder %s2335_s0, 3 }
  0x1b   : > { %s2852_s19 = scalar_select %p2482_p3, 1, 0 }
  0x1c   : > { %p53_p6 = scmp.eq.s32.totalorder %s51_s1, 0  ;;  %p2490_p7 = pnand %p1701_p4, %p441_p5 }
  0x1d   : > { %p2496_p8 = scmp.eq.s32.totalorder %s2831_s14, 0  ;;  %s2337_s23 = smov [#allocation10]  }
  0x1e   : > { %s2853_s20 = scalar_select %p2490_p7, 1, 0 }
  0x1f   : > { %s2854_s21 = scalar_select %p2496_p8, 1, 0 }
  0x20   : > { %s2501_s22 = scalar_select %p53_p6, %s2323_s27, %s55_s18  }
  0x21   : > { %p1919_p9 = pneg %p2490_p7  ;;  %s473_s24 = sshll.u32 %s2337_s23, 4  ;;  %s474_s24 = int_to_ptr.vmem [resolvable:$true] %s473_s24 }
  0x22   : > { %2855 = sst [smem:[#allocation26_spill]] %s2501_s22  ;;  %s2338_s1 = smov [#allocation13]  }
  0x23   : > { %p2507_p10 = pnand %p2496_p8, %p1919_p9  ;;  %s497_s30 = sshll.u32 %s2338_s1, 4  ;;  %s2511_s30 = int_to_ptr.vmem [resolvable:$true] %s497_s30 }
  0x24   : > { %s2857_s4 = sld [smem:[#allocation30_spill]] }
  0x25   : > { %p2521_p12 = pneg %p2507_p10 }
  0x2a   : > { %s2055_s18 = scalar_lea.hbm %s2857_s4, 16 }
  0x2b   : > { %p2056_p11 = scmp.ne.s32.totalorder %s2857_s4, %s2055_s18  ;;  %p2062_p1 = scmp.lt.u32.totalorder %s2055_s18, %s2857_s4 }
  0x2d   : > { %p2058_p13 = pnand %p2521_p12, %p2056_p11 }
  0x2f   : > { %p2059_p0 = pneg %p2058_p13 }
  0x31   : > { %p2064_p2 = pnand %p2062_p1, %p2059_p0 }
  0x33   : > { %2067 = shalt.err (!%p2064_p2)
}
  0x34   : > { %s2068_s17 = scalar_lea.vmem %s474_s24, 16  ;;  %s2075_s16 = scalar_lea.vmem %s474_s24, 32 }
  0x35   : > { %p2069_p4 = scmp.ne.s32.totalorder %s474_s24, %s2068_s17  ;;  %p2076_p9 = scmp.lt.s32.totalorder %s474_s24, %s474_s24 }
  0x36   : > { %p2077_p8 = scmp.lt.s32.totalorder %s2075_s16, %s2068_s17 }
  0x37   : > { %p2071_p5 = pnand %p2069_p4, %p2521_p12 }
  0x38   : > { %p2078_p7 = por %p2077_p8, %p2076_p9 }
  0x39   : > { %p2072_p6 = pneg %p2071_p5 }
  0x3b   : > { %p2079_p3 = pnand %p2078_p7, %p2072_p6 }
  0x3d   : > { %2082 = shalt.err (!%p2079_p3)
}
  0x3e   : > { %1925 = dma.hbm_to_vmem [thread:$0]  (!%p2507_p10), %s2857_s4, 16, %s474_s24, [#allocation11]  }
  0x3f   : > { %s2859_s6 = sld [smem:[#allocation31_spill]] }
  0x45   : > { %s2083_s1 = scalar_lea.hbm %s2859_s6, 16 }
  0x46   : > { %p2084_p11 = scmp.ne.s32.totalorder %s2859_s6, %s2083_s1  ;;  %p2090_p3 = scmp.lt.u32.totalorder %s2083_s1, %s2859_s6 }
  0x48   : > { %p2086_p13 = pnand %p2084_p11, %p2521_p12 }
  0x4a   : > { %p2087_p8 = pneg %p2086_p13 }
  0x4c   : > { %p2092_p7 = pnand %p2090_p3, %p2087_p8 }
  0x4e   : > { %2095 = shalt.err (!%p2092_p7)
}
  0x4f   : > { %s2096_s24 = scalar_lea.vmem %s2511_s30, 16  ;;  %s2103_s10 = scalar_lea.vmem %s2511_s30, 32 }
  0x50   : > { %p2097_p0 = scmp.ne.s32.totalorder %s2511_s30, %s2096_s24  ;;  %p2104_p4 = scmp.lt.s32.totalorder %s2511_s30, %s2511_s30 }
  0x51   : > { %p2105_p5 = scmp.lt.s32.totalorder %s2103_s10, %s2096_s24 }
  0x52   : > { %p2099_p1 = pnand %p2097_p0, %p2521_p12 }
  0x53   : > { %p2106_p6 = por %p2105_p5, %p2104_p4 }
  0x54   : > { %p2100_p2 = pneg %p2099_p1 }
  0x56   : > { %p2107_p9 = pnand %p2106_p6, %p2100_p2 }
  0x58   : > { %2110 = shalt.err (!%p2107_p9)
}
  0x59   : > { %1931 = dma.hbm_to_vmem [thread:$0]  (!%p2507_p10), %s2859_s6, 16, %s2511_s30, [#allocation14]  }
  0x5a   : > { %s2339_s22 = smov [#allocation16]   ;;  %s2860_s8 = sld [smem:[#allocation32_spill]] }
  0x5b   : > { %s519_s15 = sshll.u32 %s2339_s22, 4  ;;  %s520_s15 = int_to_ptr.vmem [resolvable:$true] %s519_s15 }
  0x60   : > { %s2111_s17 = scalar_lea.hbm %s2860_s8, 16 }
  0x61   : > { %p2112_p11 = scmp.ne.s32.totalorder %s2860_s8, %s2111_s17  ;;  %p2118_p3 = scmp.lt.u32.totalorder %s2111_s17, %s2860_s8 }
  0x63   : > { %p2114_p13 = pnand %p2112_p11, %p2521_p12 }
  0x65   : > { %p2115_p8 = pneg %p2114_p13 }
  0x67   : > { %p2120_p7 = pnand %p2118_p3, %p2115_p8 }
  0x69   : > { %2123 = shalt.err (!%p2120_p7)
}
  0x6a   : > { %s2124_s30 = scalar_lea.vmem %s520_s15, 16  ;;  %s2131_s13 = scalar_lea.vmem %s520_s15, 32 }
  0x6b   : > { %p2125_p0 = scmp.ne.s32.totalorder %s520_s15, %s2124_s30  ;;  %p2132_p4 = scmp.lt.s32.totalorder %s520_s15, %s520_s15 }
  0x6c   : > { %p2133_p5 = scmp.lt.s32.totalorder %s2131_s13, %s2124_s30 }
  0x6d   : > { %p2127_p1 = pnand %p2125_p0, %p2521_p12 }
  0x6e   : > { %p2134_p6 = por %p2133_p5, %p2132_p4 }
  0x6f   : > { %p2128_p2 = pneg %p2127_p1 }
  0x71   : > { %p2135_p9 = pnand %p2134_p6, %p2128_p2 }
  0x73   : > { %2138 = shalt.err (!%p2135_p9)
}
  0x74   : > { %1937 = dma.hbm_to_vmem [thread:$0]  (!%p2507_p10), %s2860_s8, 16, %s520_s15, [#allocation17]  }
  0x75   : > { %s2340_s4 = smov [#allocation7]   ;;  %s2861_s16 = sld [smem:[#allocation28_spill]] }
  0x76   : > { %s453_s18 = sshll.u32 %s2340_s4, 4  ;;  %s454_s18 = int_to_ptr.vmem [resolvable:$true] %s453_s18 }
  0x7b   : > { %s2139_s24 = scalar_lea.hbm %s2861_s16, 512 }
  0x7c   : > { %p2140_p11 = scmp.ne.s32.totalorder %s2861_s16, %s2139_s24  ;;  %p2146_p3 = scmp.lt.u32.totalorder %s2139_s24, %s2861_s16 }
  0x7e   : > { %p2142_p13 = pnand %p2140_p11, %p2521_p12 }
  0x80   : > { %p2143_p8 = pneg %p2142_p13 }
  0x82   : > { %p2148_p7 = pnand %p2146_p3, %p2143_p8 }
  0x84   : > { %2151 = shalt.err (!%p2148_p7)
}
  0x85   : > { %s2152_s15 = scalar_lea.vmem %s454_s18, 512  ;;  %p2160_p4 = scmp.lt.s32.totalorder %s454_s18, %s454_s18 }
  0x86   : > { %p2153_p0 = scmp.ne.s32.totalorder %s454_s18, %s2152_s15  ;;  %p2161_p5 = scmp.lt.s32.totalorder %s2152_s15, %s2152_s15 }
  0x88   : > { %p2155_p1 = pnand %p2153_p0, %p2521_p12  ;;  %p2162_p6 = por %p2161_p5, %p2160_p4 }
  0x8a   : > { %p2156_p2 = pneg %p2155_p1 }
  0x8c   : > { %p2163_p9 = pnand %p2162_p6, %p2156_p2 }
  0x8e   : > { %2166 = shalt.err (!%p2163_p9)
}
  0x8f   : > { %s2341_s6 = smov 128   ;;  %s2342_s14 = smov 8  }
  0x90   : > { %1922 = dma.hbm_to_vmem [thread:$0]  (!%p2507_p10), %s2861_s16, 512, %s454_s18, [#allocation8], %s2341_s6, %s2341_s6, %s2342_s14  }
  0x91   : > { %s2343_s1 = smov [#allocation12]   ;;  %s2344_s24 = smov [#allocation15]  }
  0x92   : > { %s483_s17 = sshll.u32 %s2343_s1, 4  ;;  %s508_s10 = sshll.u32 %s2344_s24, 4  ;;  %s484_s17 = int_to_ptr.vmem [resolvable:$true] %s483_s17  ;;  %s509_s10 = int_to_ptr.vmem [resolvable:$true] %s508_s10 }
  0x93   : > { %s2167_s15 = scalar_lea.hbm %s2816_s5, 512 }
  0x94   : > { %p2168_p11 = scmp.ne.s32.totalorder %s2816_s5, %s2167_s15  ;;  %p2174_p3 = scmp.lt.u32.totalorder %s2167_s15, %s2816_s5 }
  0x96   : > { %p2170_p13 = pnand %p2168_p11, %p2521_p12 }
  0x98   : > { %p2171_p8 = pneg %p2170_p13 }
  0x9a   : > { %p2176_p7 = pnand %p2174_p3, %p2171_p8 }
  0x9c   : > { %2179 = shalt.err (!%p2176_p7)
}
  0x9d   : > { %s2180_s18 = scalar_lea.vmem %s484_s17, 512  ;;  %p2188_p4 = scmp.lt.s32.totalorder %s484_s17, %s484_s17 }
  0x9e   : > { %p2181_p0 = scmp.ne.s32.totalorder %s484_s17, %s2180_s18  ;;  %p2189_p5 = scmp.lt.s32.totalorder %s2180_s18, %s2180_s18 }
  0xa0   : > { %p2183_p1 = pnand %p2181_p0, %p2521_p12  ;;  %p2190_p6 = por %p2189_p5, %p2188_p4 }
  0xa2   : > { %p2184_p2 = pneg %p2183_p1 }
  0xa4   : > { %p2191_p9 = pnand %p2190_p6, %p2184_p2 }
  0xa6   : > { %2194 = shalt.err (!%p2191_p9)
}
  0xa7   : > { %1928 = dma.hbm_to_vmem [thread:$0]  (!%p2507_p10), %s2816_s5, 512, %s484_s17, [#allocation11], %s2341_s6, %s2341_s6, %s2342_s14  }
  0xa8   : > { %s2195_s22 = scalar_lea.hbm %s2818_s7, 16 }
  0xa9   : > { %p2196_p11 = scmp.ne.s32.totalorder %s2818_s7, %s2195_s22  ;;  %p2202_p3 = scmp.lt.u32.totalorder %s2195_s22, %s2818_s7 }
  0xab   : > { %p2198_p13 = pnand %p2196_p11, %p2521_p12 }
  0xad   : > { %p2199_p8 = pneg %p2198_p13 }
  0xaf   : > { %p2204_p7 = pnand %p2202_p3, %p2199_p8 }
  0xb1   : > { %2207 = shalt.err (!%p2204_p7)
}
  0xb2   : > { %s2208_s13 = scalar_lea.vmem %s509_s10, 16  ;;  %s2215_s17 = scalar_lea.vmem %s509_s10, 32 }
  0xb3   : > { %p2209_p0 = scmp.ne.s32.totalorder %s509_s10, %s2208_s13  ;;  %p2216_p4 = scmp.lt.s32.totalorder %s509_s10, %s509_s10 }
  0xb4   : > { %p2217_p5 = scmp.lt.s32.totalorder %s2215_s17, %s2208_s13 }
  0xb5   : > { %p2211_p1 = pnand %p2209_p0, %p2521_p12 }
  0xb6   : > { %p2218_p6 = por %p2217_p5, %p2216_p4 }
  0xb7   : > { %p2212_p2 = pneg %p2211_p1 }
  0xb9   : > { %p2219_p9 = pnand %p2218_p6, %p2212_p2 }
  0xbb   : > { %2222 = shalt.err (!%p2219_p9)
}
  0xbc   : > { %1934 = dma.hbm_to_vmem [thread:$0]  (!%p2507_p10), %s2818_s7, 16, %s509_s10, [#allocation14]  }
  0xbd   : > { %s2345_s3 = smov [#allocation18]   ;;  %s2223_s22 = scalar_lea.hbm %s2822_s11, 512 }
  0xbe   : > { %s535_s8 = sshll.u32 %s2345_s3, 4  ;;  %p2224_p11 = scmp.ne.s32.totalorder %s2822_s11, %s2223_s22  ;;  %s536_s8 = int_to_ptr.vmem [resolvable:$true] %s535_s8 }
  0xbf   : > { %p2230_p3 = scmp.lt.u32.totalorder %s2223_s22, %s2822_s11 }
  0xc0   : > { %p2226_p13 = pnand %p2224_p11, %p2521_p12 }
  0xc2   : > { %p2227_p8 = pneg %p2226_p13 }
  0xc4   : > { %p2232_p7 = pnand %p2230_p3, %p2227_p8 }
  0xc6   : > { %2235 = shalt.err (!%p2232_p7)
}
  0xc7   : > { %s2236_s10 = scalar_lea.vmem %s536_s8, 512  ;;  %p2244_p4 = scmp.lt.s32.totalorder %s536_s8, %s536_s8 }
  0xc8   : > { %p2237_p0 = scmp.ne.s32.totalorder %s536_s8, %s2236_s10  ;;  %p2245_p5 = scmp.lt.s32.totalorder %s2236_s10, %s2236_s10 }
  0xca   : > { %p2239_p1 = pnand %p2237_p0, %p2521_p12  ;;  %p2246_p6 = por %p2245_p5, %p2244_p4 }
  0xcc   : > { %p2240_p2 = pneg %p2239_p1 }
  0xce   : > { %p2247_p9 = pnand %p2246_p6, %p2240_p2 }
  0xd0   : > { %2250 = shalt.err (!%p2247_p9)
}
  0xd1   : > { %1940 = dma.hbm_to_vmem [thread:$0]  (!%p2507_p10), %s2822_s11, 512, %s536_s8, [#allocation17], %s2341_s6, %s2341_s6, %s2342_s14  }
  0xd2   : > { %p1709_p11 = scmp.ge.s32.totalorder %s2335_s0, 2 }
  0xd3   : > { %p2862_p12 = scmp.ne.s32.totalorder (!%p1709_p11), %s2852_s19, 0 }
  0xd4   : > { %560 = sbr.rel (%p1709_p11) target bundleno = 230 (0xe6), region = 80 }
  0xdb   : > { %563 = sbr.rel (!%p2862_p12) target bundleno = 230 (0xe6), region = 84  ;;  %s565_s23 = sand.u32 (%p2862_p12), 1, %s2323_s27  }
  0xdc   : > { %s1711_s15 = sshll.u32 (%p2862_p12), %s2331_s29, 3  ;;  %s1710_s18 = sshll.u32 (%p2862_p12), %s565_s23, 4 }
  0xdd   : > { %s2863_s9 = sld [smem:[#allocation27_spill]] (%p2862_p12)  ;;  %s567_s22 = scalar_lea.vmem (%p2862_p12), [#allocation6], %s1710_s18 }
  0xe3   : > { %s572_s12 = scalar_lea.vmem %s2863_s9, %s1711_s15 }
  0xe4   : > { %v602_v1 = vld [vmem:[%s572_s12] sm:$0xff]  ;;  %v604_v2 = vld [vmem:[%s572_s12 + $0x10] sm:$0xff] }
  0xe5   : > { %603 = vst [vmem:[%s567_s22] sm:$0xff] %v602_v1  ;;  %605 = vst [vmem:[%s567_s22 + $0x8] sm:$0xff] %v604_v2 }
  0xe6 PF: > { %p2864_p10 = scmp.ne.s32.totalorder %s2853_s20, 0 }
  0xe7   : > { %s617_s19 = sand.u32 (!%p2864_p10), 1, %s2319_s26   ;;  %p2865_p13 = scmp.ne.s32.totalorder (!%p2864_p10), %s2854_s21, 0 }
  0xe8   : > { %614 = sbr.rel (%p2864_p10) target bundleno = 2747 (0xabb), region = 122  ;;  %s2671_s6 = sshll.u32 (!%p2864_p10), %s617_s19, 4 }
  0xe9   : > { %s619_s14 = scalar_lea.vmem (!%p2864_p10), [#allocation6], %s2671_s6 }
  0xef   : > { %2298 = dma.done.wait (%p2865_p13), [#allocation8], 512  }
  0xf0   : > { %2300 = vsyncadd (%p2865_p13), [#allocation8], 4294966784 }
  0xf1   : > { %2302 = dma.done.wait (%p2865_p13), [#allocation11], 528  }
  0xf2   : > { %2304 = vsyncadd (%p2865_p13), [#allocation11], 4294966768 }
  0xf3   : > { %2306 = dma.done.wait (%p2865_p13), [#allocation14], 32  }
  0xf4   : > { %2308 = vsyncadd (%p2865_p13), [#allocation14], 4294967264 }
  0xf5   : > { %2310 = dma.done.wait (%p2865_p13), [#allocation17], 528  }
  0xf6   : > { %2312 = vsyncadd (%p2865_p13), [#allocation17], 4294966768  ;;  %p1721_p8 = scmp.ne.s32.totalorder %s2327_s28, 0 }
  0xf7   : > { %vm696_vm0 = vcmask (!%p1721_p8), 1024   ;;  %vm699_vm1 = vcmask (!%p1721_p8), 254976   ;;  %v2346_v3 = vmov (!%p1721_p8), -inf   ;;  %v2347_v4 = vmov (!%p1721_p8), 0.0  }
  0xf8   : > { %695 = sbr.rel (%p1721_p8) target bundleno = 255 (0xff), region = 158  ;;  %697 = vst.msk [vmem:[#allocation2] sm:$0x3] (!%p1721_p8), %vm696_vm0, %v2346_v3  ;;  %698 = vst.msk [vmem:[#allocation3] sm:$0x3] (!%p1721_p8), %vm696_vm0, %v2347_v4 }
  0xf9   : > { %700 = vst.msk [vmem:[#allocation4] sm:$0x3] (!%p1721_p8), %vm699_vm1, %v2347_v4 }
  0xff PF: > { %v703_v5 = vld [vmem:[#allocation7] sm:$0xff]  ;;  %v704_v6 = vld [vmem:[#allocation7 + $0x8] sm:$0xff]  ;;  %v705_v7 = vld [vmem:[#allocation7 + $0x10] sm:$0xff]  ;;  %vm714_vm2 = vcmask 261120   ;;  %s2866_s4 = sld [smem:[#allocation29_spill]]  ;;  %s2867_s30 = sld [smem:[#allocation33_spill]] }
 0x100   : > { %v1849_v8 = vpack.c.bf16 %v704_v6, %v703_v5  ;;  %v706_v9 = vld [vmem:[#allocation7 + $0x18] sm:$0xff]  ;;  %v701_v10 = vld [vmem:[%s619_s14] sm:$0xff]  ;;  %s2868_s9 = sld [smem:[#allocation35_spill]]  ;;  %s2869_s19 = sld [smem:[#allocation34_spill]]  ;;  %vm1247_vm3 = vcmask 1041409   ;;  %vm1250_vm4 = vcmask 58368  }
 0x101   : > { %v1853_v11 = vpack.c.bf16 %v706_v9, %v705_v7  ;;  %1792 = vmatprep.mubr.msk.f32.mxu0 %vm714_vm2, %v701_v10  ;;  %v702_v12 = vld [vmem:[%s619_s14 + $0x8] sm:$0xff]  ;;  %v1726_v45 = vld [vmem:[#allocation10] ss:$0 sm:$0xff]  ;;  %v1727_v6 = vld [vmem:[#allocation13] ss:$0 sm:$0xff]  ;;  %s2870_s26 = sld [smem:[#allocation36_spill]] }
 0x102   : > { %1850 = vmatprep.subr.bf16.mxu0 %v1849_v8  ;;  %v1722_v13 = vld [vmem:[%s2813_s2] ss:$0 sm:$0xff]  ;;  %v859_v30 = vld [vmem:[#allocation12] sm:$0xff]  ;;  %v860_v31 = vld [vmem:[#allocation12 + $0x8] sm:$0xff]  ;;  %vm1302_vm5 = vcmask 1024   ;;  %vm2350_vm6 = vmmov 0  }
 0x103   : > { %1852 = vmatpush3.bf16.msra.mxu0 %v1849_v8  ;;  %v861_v32 = vld [vmem:[#allocation12 + $0x10] sm:$0xff]  ;;  %v1857_v33 = vpack.c.bf16 %v860_v31, %v859_v30  ;;  %v862_v34 = vld [vmem:[#allocation12 + $0x18] sm:$0xff]  ;;  %vm1304_vm7 = vcmask 64512   ;;  %vm1462_vm8 = vcmask 254976   ;;  %p1744_p3 = scmp.ne.s32.totalorder %s2327_s28, 1 }
 0x104   : > { %1854 = vmatprep.subr.bf16.mxu0 %v1853_v11  ;;  %v1861_v35 = vpack.c.bf16 %v862_v34, %v861_v32  ;;  %v1109_v32 = vld [vmem:[#allocation18 + $0x10] sm:$0xff]  ;;  %s2871_s8 = sld [smem:[#allocation37_spill]] (!%p1744_p3)  ;;  %vm2353_vm9 = vmmov (!%p1744_p3), 0   ;;  %s2872_s15 = sld [smem:[#allocation38_spill]] (!%p1744_p3)  ;;  %vm1562_vm10 = vcmask (!%p1744_p3), 25600  }
 0x105   : > { %1858 = vmatprep.subr.bf16.mxu1 %v1857_v33  ;;  %v1725_v43 = vld [vmem:[%s2866_s4] ss:$0 sm:$0xff] }
 0x106   : > { %1860 = vmatpush3.bf16.msra.mxu1 %v1857_v33  ;;  %v1110_v33 = vld [vmem:[#allocation18 + $0x18] sm:$0xff] }
 0x107   : > { %1856 = vmatpush3.bf16.msra.mxu0 %v1853_v11  ;;  %1862 = vmatprep.subr.bf16.mxu1 %v1861_v35  ;;  %v1877_v34 = vpack.c.bf16 %v1110_v33, %v1109_v32 }
 0x10a   : > { %1793 = vmatmul.mubr.msk.f32.vlgmr.msra.gmra.mrb[0].mxu0 %vm714_vm2, %v702_v12  ;;  %1864 = vmatpush3.bf16.msra.mxu1 %v1861_v35  ;;  %v2348_v35 = vmov 0.0  }
 0x1dd   : > { %v1794_v14 = vpop.f32.mrb[0].mxu0 }
 0x1de   : > { %v787_v15 = vpop.f32.mrb[1].mxu0  ;;  %v793_v17 = vadd.f32 %v1794_v14, %v1722_v13 }
 0x1df   : > { %v788_v16 = vadd.f32 %v1722_v13, %v787_v15 }
 0x1e0   : > { %v801_v19 = vsel %vm714_vm2, %v793_v17, 0.0 }
 0x1e1   : > { %v798_v18 = vsel %vm714_vm2, %v788_v16, 0.0 }
 0x1e2   : > { %799 = vadd.xlane.f32.xlu0 %v798_v18 }
 0x1e6   : > { %802 = vadd.xlane.f32.xlu0 %v801_v19 }
 0x26f   : > { %v800_v20 = vpop.xlane.xlu0 %799 }
 0x270   : > { %v805_v21 = vmul.f32 0.03125, %v800_v20 }
 0x272   : > { %v807_v22 = vsub.f32 %v788_v16, %v805_v21 }
 0x273   : > { %v803_v23 = vpop.xlane.xlu0 %802 }
 0x274   : > { %v806_v24 = vmul.f32 0.03125, %v803_v23  ;;  %v809_v25 = vmul.f32 %v807_v22, %v807_v22  ;;  %v1013_v23 = vld [vmem:[%s2867_s30] sm:$0xff] }
 0x276   : > { %v808_v26 = vsub.f32 %v793_v17, %v806_v24  ;;  %v811_v27 = vsel %vm714_vm2, %v809_v25, 0.0  ;;  %v1014_v24 = vld [vmem:[%s2867_s30 + $0x8] sm:$0xff] }
 0x277   : > { %812 = vadd.xlane.f32.xlu1 %v811_v27  ;;  %v1107_v25 = vld [vmem:[#allocation18] sm:$0xff]  ;;  %v1108_v27 = vld [vmem:[#allocation18 + $0x8] sm:$0xff] }
 0x278   : > { %v810_v28 = vmul.f32 %v808_v26, %v808_v26  ;;  %v1873_v30 = vpack.c.bf16 %v1108_v27, %v1107_v25 }
 0x27a   : > { %v814_v29 = vsel %vm714_vm2, %v810_v28, 0.0  ;;  %v1015_v28 = vld [vmem:[%s2867_s30 + $0x10] sm:$0xff]  ;;  %1874 = vmatprep.subr.bf16.mxu1 %v1873_v30 }
 0x27b   : > { %815 = vadd.xlane.f32.xlu1 %v814_v29  ;;  %v1016_v29 = vld [vmem:[%s2867_s30 + $0x18] sm:$0xff] }
 0x27c   : > { %v1869_v31 = vpack.c.bf16 %v1016_v29, %v1015_v28 }
 0x304   : > { %v813_v36 = vpop.xlane.xlu1 %812 }
 0x305   : > { %v817_v37 = vmul.f32 0.03125, %v813_v36 }
 0x307   : > { %v819_v38 = vadd.f32 1e-05, %v817_v37 }
 0x308   : > { %v816_v39 = vpop.xlane.xlu1 %815 }
 0x309   : > { %2018 = vrsqrt.f32 %v819_v38  ;;  %v818_v40 = vmul.f32 0.03125, %v816_v39 }
 0x30b   : > { %v820_v41 = vadd.f32 1e-05, %v818_v40 }
 0x30d   : > { %2020 = vrsqrt.f32 %v820_v41 }
 0x313   : > { %v2019_v42 = vpop.eup %2018 }
 0x314   : > { %v823_v44 = vmul.f32 %v2019_v42, %v807_v22 }
 0x316   : > { %v831_v46 = vmul.f32 %v1725_v43, %v823_v44 }
 0x317   : > { %v2021_v47 = vpop.eup %2020 }
 0x318   : > { %v824_v48 = vmul.f32 %v2021_v47, %v808_v26  ;;  %v839_v49 = vadd.f32 %v1726_v45, %v831_v46  ;;  %v1865_v26 = vpack.c.bf16 %v1014_v24, %v1013_v23  ;;  %v1731_v46 = vld [vmem:[#allocation16] ss:$0 sm:$0xff] }
 0x31a   : > { %v832_v50 = vmul.f32 %v1725_v43, %v824_v48  ;;  %v841_v51 = vmul.f32 %v839_v49, %v839_v49  ;;  %1866 = vmatprep.subr.bf16.mxu0 %v1865_v26  ;;  %v1730_v43 = vld [vmem:[#allocation15] ss:$0 sm:$0xff] }
 0x31b   : > { %1868 = vmatpush3.bf16.msra.mxu0 %v1865_v26  ;;  %v1740_v26 = vld [vmem:[%s2870_s26] ss:$0 sm:$0xff] }
 0x31c   : > { %v840_v52 = vadd.f32 %v1726_v45, %v832_v50  ;;  %v843_v53 = vmul.f32 %v841_v51, %v839_v49  ;;  %1870 = vmatprep.subr.bf16.mxu0 %v1869_v31 }
 0x31e   : > { %v845_v54 = vmul.f32 0.044715, %v843_v53  ;;  %v842_v55 = vmul.f32 %v840_v52, %v840_v52 }
 0x31f   : > { %1872 = vmatpush3.bf16.msra.mxu0 %v1869_v31 }
 0x320   : > { %v847_v56 = vadd.f32 %v845_v54, %v839_v49  ;;  %v844_v57 = vmul.f32 %v842_v55, %v840_v52  ;;  %1828 = vmatprep.subr.mxu0 %v2348_v35 }
 0x322   : > { %v849_v58 = vmul.f32 0.7978846, %v847_v56  ;;  %v846_v59 = vmul.f32 0.044715, %v844_v57 }
 0x324   : > { %2022 = vtanh.f32 %v849_v58  ;;  %v848_v60 = vadd.f32 %v846_v59, %v840_v52 }
 0x326   : > { %v850_v61 = vmul.f32 0.7978846, %v848_v60 }
 0x328   : > { %2024 = vtanh.f32 %v850_v61 }
 0x32e   : > { %v2023_v62 = vpop.eup %2022 }
 0x32f   : > { %v853_v63 = vadd.f32 1.0, %v2023_v62 }
 0x331   : > { %v855_v0 = vmul.f32 0.5, %v853_v63 }
 0x332   : > { %v2025_v1 = vpop.eup %2024 }
 0x333   : > { %v857_v2 = vmul.f32 %v855_v0, %v839_v49  ;;  %v854_v3 = vadd.f32 1.0, %v2025_v1 }
 0x335   : > { %1803 = vmatprep.mubr.msk.f32.mxu1 %vm714_vm2, %v857_v2  ;;  %v856_v4 = vmul.f32 0.5, %v854_v3 }
 0x337   : > { %v858_v5 = vmul.f32 %v856_v4, %v840_v52 }
 0x339   : > { %1804 = vmatmul.mubr.msk.f32.vlgmr.msra.gmra.mrb[0].mxu1 %vm714_vm2, %v858_v5 }
 0x33a   : > { %1876 = vmatpush3.bf16.msra.mxu1 %v1873_v30 }
 0x33b   : > { %1878 = vmatprep.subr.bf16.mxu1 %v1877_v34 }
 0x33e   : > { %1880 = vmatpush3.bf16.msra.mxu1 %v1877_v34  ;;  %v1741_v34 = vld [vmem:[#allocation5] ss:$0 sm:$0xff] }
 0x33f   : > { %1833 = vmatprep.subr.mxu1 %v2348_v35 }
 0x40c   : > { %v1805_v7 = vpop.f32.mrb[0].mxu1 }
 0x40d   : > { %v948_v8 = vadd.f32 %v1805_v7, %v1727_v6  ;;  %v942_v9 = vpop.f32.mrb[1].mxu1  ;;  %v1735_v7 = vld [vmem:[%s2868_s9] ss:$0 sm:$0xff] }
 0x40e   : > { %v943_v10 = vadd.f32 %v1727_v6, %v942_v9  ;;  %v2349_v6 = vmov 0  }
 0x40f   : > { %v956_v11 = vsel %vm714_vm2, %v948_v8, 0.0  ;;  %2016 = vset.pattern.permute.xlu0 %v2349_v6  ;;  %2017 = vset.pattern.permute.xlu1 %v2349_v6 }
 0x410   : > { %957 = vadd.xlane.f32.xlu1 %v956_v11  ;;  %v953_v12 = vsel %vm714_vm2, %v943_v10, 0.0 }
 0x411   : > { %954 = vadd.xlane.f32.xlu0 %v953_v12 }
 0x49d   : > { %v958_v13 = vpop.xlane.xlu1 %957 }
 0x49e   : > { %v960_v14 = vmul.f32 0.03125, %v958_v13  ;;  %v955_v15 = vpop.xlane.xlu0 %954 }
 0x49f   : > { %v959_v16 = vmul.f32 0.03125, %v955_v15 }
 0x4a0   : > { %v962_v17 = vsub.f32 %v948_v8, %v960_v14 }
 0x4a1   : > { %v961_v18 = vsub.f32 %v943_v10, %v959_v16  ;;  %v1732_v16 = vld [vmem:[%s2869_s19] ss:$0 sm:$0xff] }
 0x4a2   : > { %v964_v19 = vmul.f32 %v962_v17, %v962_v17 }
 0x4a3   : > { %v963_v20 = vmul.f32 %v961_v18, %v961_v18 }
 0x4a4   : > { %v968_v21 = vsel %vm714_vm2, %v964_v19, 0.0 }
 0x4a5   : > { %969 = vadd.xlane.f32.xlu1 %v968_v21  ;;  %v965_v22 = vsel %vm714_vm2, %v963_v20, 0.0 }
 0x4a6   : > { %966 = vadd.xlane.f32.xlu0 %v965_v22 }
 0x532   : > { %v970_v36 = vpop.xlane.xlu1 %969 }
 0x533   : > { %v972_v37 = vmul.f32 0.03125, %v970_v36  ;;  %v967_v38 = vpop.xlane.xlu0 %966  ;;  %v1237_v36 = vlaneseq }
 0x534   : > { %v971_v39 = vmul.f32 0.03125, %v967_v38 }
 0x535   : > { %v974_v40 = vadd.f32 1e-05, %v972_v37  ;;  %v1238_v37 = vand.u32 127, %v1237_v36  ;;  %v1240_v38 = vshrl.u32 %v1237_v36, 7  ;;  %v1745_v36 = vld [vmem:[%s2872_s15] ss:$0 sm:$0xff] (!%p1744_p3) }
 0x536   : > { %v973_v41 = vadd.f32 1e-05, %v971_v39 }
 0x537   : > { %2026 = vrsqrt.f32 %v974_v40  ;;  %v1241_v40 = vsub.s32 %v1238_v37, %v1240_v38 }
 0x538   : > { %2028 = vrsqrt.f32 %v973_v41 }
 0x541   : > { %v2027_v42 = vpop.eup %2026 }
 0x542   : > { %v2029_v44 = vpop.eup %2028  ;;  %v978_v45 = vmul.f32 %v2027_v42, %v962_v17 }
 0x543   : > { %v977_v47 = vmul.f32 %v2029_v44, %v961_v18 }
 0x544   : > { %v986_v48 = vmul.f32 %v1730_v43, %v978_v45 }
 0x545   : > { %v985_v49 = vmul.f32 %v1730_v43, %v977_v47 }
 0x546   : > { %v994_v50 = vadd.f32 %v1731_v46, %v986_v48 }
 0x547   : > { %v993_v51 = vadd.f32 %v1731_v46, %v985_v49  ;;  %v1234_v49 = vld [vmem:[#allocation2] sm:$0x3] }
 0x548   : > { %v996_v52 = vmul.f32 %v994_v50, %v994_v50 }
 0x549   : > { %v995_v53 = vmul.f32 %v993_v51, %v993_v51 }
 0x54a   : > { %v998_v54 = vmul.f32 %v996_v52, %v994_v50 }
 0x54b   : > { %v997_v55 = vmul.f32 %v995_v53, %v993_v51 }
 0x54c   : > { %v1000_v56 = vmul.f32 0.044715, %v998_v54 }
 0x54d   : > { %v999_v57 = vmul.f32 0.044715, %v997_v55  ;;  %v1264_v55 = vsub.s32 0, %v1240_v38 }
 0x54e   : > { %v1002_v58 = vadd.f32 %v1000_v56, %v994_v50  ;;  %v1268_v56 = vsub.s32 1, %v1240_v38 }
 0x54f   : > { %v1001_v59 = vadd.f32 %v999_v57, %v993_v51 }
 0x550   : > { %v1004_v60 = vmul.f32 0.7978846, %v1002_v58 }
 0x551   : > { %v1003_v61 = vmul.f32 0.7978846, %v1001_v59 }
 0x552   : > { %2030 = vtanh.f32 %v1004_v60 }
 0x553   : > { %2032 = vtanh.f32 %v1003_v61 }
 0x55c   : > { %v2031_v62 = vpop.eup %2030 }
 0x55d   : > { %v2033_v63 = vpop.eup %2032  ;;  %v1008_v0 = vadd.f32 1.0, %v2031_v62 }
 0x55e   : > { %v1007_v1 = vadd.f32 1.0, %v2033_v63 }
 0x55f   : > { %v1010_v2 = vmul.f32 0.5, %v1008_v0 }
 0x560   : > { %v1009_v3 = vmul.f32 0.5, %v1007_v1 }
 0x561   : > { %v1012_v5 = vmul.f32 %v1010_v2, %v994_v50 }
 0x562   : > { %v1011_v4 = vmul.f32 %v1009_v3, %v993_v51 }
 0x564   : > { %1814 = vmatprep.mubr.msk.f32.mxu0 %vm714_vm2, %v1011_v4  ;;  %1825 = vmatprep.mubr.msk.f32.mxu1 %vm714_vm2, %v1011_v4 }
 0x565   : > { %1815 = vmatmul.mubr.msk.f32.vlgmr.msra.gmra.mrb[2].mxu0 %vm714_vm2, %v1012_v5  ;;  %1826 = vmatmul.mubr.msk.f32.vlgmr.msra.gmra.mrb[2].mxu1 %vm714_vm2, %v1012_v5 }
 0x566   : > { %1829 = vmatpush3.msra.mxu0 %v1011_v4  ;;  %1834 = vmatpush3.msra.mxu1 %v1012_v5 }
 0x567   : > { %1835 = vmatprep.mubr.msk.f32.mxu1 %vm2350_vm6, %v2348_v35  ;;  %1830 = vmatprep.mubr.msk.f32.mxu0 %vm2350_vm6, %v2348_v35 }
 0x638   : > { %v1816_v8 = vpop.f32.mrb[2].mxu0  ;;  %v1827_v9 = vpop.f32.mrb[2].mxu1 }
 0x639   : > { %v1190_v10 = vadd.f32 %v1827_v9, %v1735_v7  ;;  %v1096_v11 = vpop.f32.mrb[3].mxu0  ;;  %v1184_v12 = vpop.f32.mrb[3].mxu1  ;;  %v1102_v17 = vadd.f32 %v1816_v8, %v1732_v16  ;;  %v1278_v8 = vld [vmem:[#allocation3] sm:$0x3] }
 0x63a   : > { %v1185_v13 = vadd.f32 %v1735_v7, %v1184_v12  ;;  %v1097_v18 = vadd.f32 %v1732_v16, %v1096_v11  ;;  %v1449_v12 = vld [vmem:[#allocation4] sm:$0x3] }
 0x63b   : > { %v1739_v14 = vmul.f32 -1.442695, %v1190_v10 }
 0x63c   : > { %v1738_v15 = vmul.f32 -1.442695, %v1185_v13 }
 0x63d   : > { %2034 = vpow2.f32 %v1739_v14 }
 0x63e   : > { %2036 = vpow2.f32 %v1738_v15 }
 0x63f   : > { %2038 = vtanh.f32 %v1102_v17 }
 0x640   : > { %2040 = vtanh.f32 %v1097_v18 }
 0x647   : > { %v2035_v19 = vpop.eup %2034 }
 0x648   : > { %v2037_v20 = vpop.eup %2036  ;;  %v1200_v21 = vadd.f32 1.0, %v2035_v19 }
 0x649   : > { %v1199_v22 = vadd.f32 1.0, %v2037_v20  ;;  %v2039_v23 = vpop.eup %2038 }
 0x64a   : > { %2042 = vrcp.f32 %v1200_v21  ;;  %v2041_v24 = vpop.eup %2040 }
 0x64b   : > { %2044 = vrcp.f32 %v1199_v22  ;;  %v1478_v22 = vld [vmem:[%s2871_s8] sm:$0xff] (!%p1744_p3) }
 0x654   : > { %v2043_v25 = vpop.eup %2042 }
 0x655   : > { %v2045_v27 = vpop.eup %2044  ;;  %v1206_v28 = vmul.f32 %v2043_v25, %v2039_v23  ;;  %v1479_v23 = vld [vmem:[%s2871_s8 + $0x8] sm:$0xff] (!%p1744_p3)  ;;  %v2352_v25 = vmov (!%p1744_p3), 0.0|0.0  }
 0x656   : > { %v1205_v29 = vmul.f32 %v2045_v27, %v2041_v24  ;;  %v2351_v24 = vmov (!%p1744_p3), 0   ;;  %1881 = vmatprep.subr.bf16.mxu0 (!%p1744_p3), %v2352_v25  ;;  %v1480_v27 = vld [vmem:[%s2871_s8 + $0x10] sm:$0xff] (!%p1744_p3) }
 0x657   : > { %v1215_v30 = vmul.f32 %v1740_v26, %v1206_v28  ;;  %v1481_v28 = vld [vmem:[%s2871_s8 + $0x18] sm:$0xff] (!%p1744_p3) }
 0x658   : > { %v1214_v31 = vmul.f32 %v1740_v26, %v1205_v29  ;;  %v1882_v26 = vpack.c.bf16 (!%p1744_p3), %v1479_v23, %v1478_v22  ;;  %v1885_v29 = vpack.c.bf16 (!%p1744_p3), %v1481_v28, %v1480_v27 }
 0x659   : > { %v1219_v32 = vsel %vm714_vm2, %v1215_v30, 0.0 }
 0x65a   : > { %1220 = vadd.xlane.f32.xlu1 %v1219_v32  ;;  %v1216_v33 = vsel %vm714_vm2, %v1214_v31, 0.0  ;;  %v2354_v31 = vmov (!%p1744_p3), 0.0  }
 0x65b   : > { %1217 = vadd.xlane.f32.xlu0 %v1216_v33 }
 0x671   : > { %1229 = vperm.xlu0 %2016, %v1741_v34  }
 0x6e7   : > { %v1221_v41 = vpop.xlane.xlu1 %1220 }
 0x6e8   : > { %v1218_v39 = vpop.xlane.xlu0 %1217 }
 0x6f0   : > { %v1230_v42 = vpop.permute.xlu0 %1229 }
 0x6f1   : > { %v1232_v43 = vadd.f32 %v1230_v42, %v1218_v39  ;;  %v1233_v44 = vadd.f32 %v1230_v42, %v1221_v41 }
 0x6f3   : > { %v1242_v45 = vrot.slane %v1232_v43, %v1241_v40  ;;  %v1246_v46 = vrot.slane %v1233_v44, %v1241_v40 }
 0x6f5   : > { %v1248_v47 = vsel %vm1247_vm3, %v1246_v46, %v1242_v45 }
 0x6f6   : > { %v1251_v48 = vsel %vm1250_vm4, %v1248_v47, -inf }
 0x6f7   : > { %1252 = vmax.xlane.f32.xlu1 %v1251_v48 }
 0x784   : > { %v1253_v50 = vpop.xlane.xlu1 %1252 }
 0x785   : > { %v1254_v51 = vmax.f32 %v1234_v49, %v1253_v50 }
 0x787   : > { %v1255_v52 = vsub.f32 %v1234_v49, %v1254_v51  ;;  %1464 = vst.msk [vmem:[#allocation2] sm:$0x3] %vm1302_vm5, %v1254_v51  ;;  %1260 = vperm.xlu1 %2017, %v1254_v51  }
 0x789   : > { %v1256_v53 = vmul.f32 1.442695, %v1255_v52 }
 0x78b   : > { %2046 = vpow2.f32 %v1256_v53 }
 0x795   : > { %v2047_v54 = vpop.eup %2046 }
 0x796   : > { %1452 = vperm.xlu0 %2016, %v2047_v54   ;;  %v1279_v9 = vmul.f32 %v2047_v54, %v1278_v8 }
 0x79a   : > { %2052 = vset.pattern.permute.xlu0 (!%p1744_p3), %v2351_v24 }
 0x806   : > { %v1261_v57 = vpop.permute.xlu1 %1260 }
 0x807   : > { %v1265_v58 = vrot.slane %v1261_v57, %v1264_v55  ;;  %v1269_v59 = vrot.slane %v1261_v57, %v1268_v56 }
 0x809   : > { %v1273_v60 = vsub.f32 %v1233_v44, %v1269_v59  ;;  %v1272_v61 = vsub.f32 %v1232_v43, %v1265_v58 }
 0x80b   : > { %v1276_v62 = vmul.f32 1.442695, %v1273_v60  ;;  %v1274_v63 = vmul.f32 1.442695, %v1272_v61 }
 0x80d   : > { %2048 = vpow2.f32 %v1276_v62 }
 0x80e   : > { %2050 = vpow2.f32 %v1274_v63 }
 0x815   : > { %v1453_v13 = vpop.permute.xlu0 %1452 }
 0x816   : > { %v1455_v16 = vmul.f32 %v1453_v13, %v1449_v12 }
 0x817   : > { %v2049_v0 = vpop.eup %2048 }
 0x818   : > { %1286 = vperm.xlu1 %2017, %v2049_v0   ;;  %v2051_v1 = vpop.eup %2050 }
 0x81c   : > { %1283 = vperm.xlu1 %2017, %v2051_v1  }
 0x897   : > { %v1287_v2 = vpop.permute.xlu1 %1286 }
 0x898   : > { %v1295_v3 = vrot.slane %v1287_v2, %v1241_v40 }
 0x89a   : > { %1836 = vmatmul.mubr.msk.f32.vlgmr.msra.gmra.mrb[4].mxu1 %vm1304_vm7, %v1295_v3 }
 0x89b   : > { %v1284_v4 = vpop.permute.xlu1 %1283 }
 0x89c   : > { %v1291_v5 = vrot.slane %v1284_v4, %v1241_v40 }
 0x89e   : > { %1831 = vmatmul.mubr.msk.f32.vlgmr.msra.gmra.mrb[4].mxu0 %vm1304_vm7, %v1291_v5  ;;  %v1296_v6 = vsel %vm1247_vm3, %v1295_v3, %v1291_v5 }
 0x89f   : > { %v1298_v7 = vsel %vm1250_vm4, %v1296_v6, 0.0  ;;  %1883 = vmatpush3.bf16.msra.mxu0 (!%p1744_p3), %v1882_v26  ;;  %1846 = vmatprep.mubr.msk.f32.mxu0 (!%p1744_p3), %vm2353_vm9, %v2354_v31 }
 0x8a0   : > { %1299 = vadd.xlane.f32.xlu1 %v1298_v7  ;;  %1884 = vmatprep.subr.bf16.mxu0 (!%p1744_p3), %v2352_v25 }
 0x8a3   : > { %1886 = vmatpush3.bf16.msra.mxu0 (!%p1744_p3), %v1885_v29 }
 0x92d   : > { %v1300_v10 = vpop.xlane.xlu1 %1299 }
 0x92e   : > { %v1301_v11 = vadd.f32 %v1300_v10, %v1279_v9 }
 0x930   : > { %1303 = vst.msk [vmem:[#allocation3] sm:$0x3] %vm1302_vm5, %v1301_v11 }
 0x937   : > { %v1470_v21 = vld [vmem:[#allocation3] sm:$0x3] (!%p1744_p3) }
 0x938   : > { %2053 = vrcp.f32 (!%p1744_p3), %v1470_v21 }
 0x942   : > { %v2054_v30 = vpop.eup (!%p1744_p3), %2053 }
 0x943   : > { %1474 = vperm.xlu0 (!%p1744_p3), %2052, %v2054_v30  }
 0x96d   : > { %v1445_v35 = vpop.f32.mrb[4].mxu1 }
 0x96e   : > { %v1837_v14 = vpop.f32.mrb[5].mxu1  ;;  %v1458_v15 = vrot.slane %v1445_v35, 7 }
 0x96f   : > { %1468 = sbr.rel (%p1744_p3) target bundleno = 2716 (0xa9c), region = 162 }
 0x971   : > { %v1373_v17 = vpop.f32.mrb[4].mxu0 }
 0x972   : > { %v1459_v18 = vsel %vm1247_vm3, %v1458_v15, %v1373_v17  ;;  %v1832_v19 = vpop.f32.mrb[5].mxu0 }
 0x973   : > { %v1461_v20 = vadd.f32 %v1459_v18, %v1455_v16 }
 0x975   : > { %1463 = vst.msk [vmem:[#allocation4] sm:$0x3] %vm1462_vm8, %v1461_v20 }
 0x97c   : > { %v1469_v32 = vld [vmem:[#allocation4] sm:$0x3] }
 0x9c2   : > { %v1475_v33 = vpop.permute.xlu0 %1474 }
 0x9c3   : > { %v1477_v34 = vmul.f32 %v1475_v33, %v1469_v32 }
 0x9c5   : > { %1847 = vmatmul.mubr.msk.f32.vlgmr.msra.gmra.mrb[0].mxu0 %vm714_vm2, %v1477_v34 }
 0xa98   : > { %v1558_v37 = vpop.f32.mrb[0].mxu0 }
 0xa99   : > { %v1559_v38 = vadd.f32 %v1745_v36, %v1558_v37  ;;  %v1848_v39 = vpop.f32.mrb[1].mxu0 }
 0xa9b   : > { %1563 = vst.msk [vmem:[#allocation19] sm:$0x3] %vm1562_vm10, %v1559_v38 }
 0xa9c PF: > { %s2873_s18 = sadd.s32 4294967295, %s2335_s0   ;;  %s2355_s25 = smov [#allocation19]  }
 0xa9d   : > { %p2770_p7 = scmp.eq.s32.totalorder %s2873_s18, 1  ;;  %s1573_s9 = sshll.u32 %s2355_s25, 4  ;;  %s1574_s9 = int_to_ptr.vmem [resolvable:$true] %s1573_s9 }
 0xa9e   : > { %s2251_s12 = scalar_lea.vmem %s1574_s9, 32  ;;  %p2258_p4 = scmp.lt.s32.totalorder %s1574_s9, %s1574_s9 }
 0xa9f   : > { %p2252_p0 = scmp.ne.s32.totalorder %s1574_s9, %s2251_s12  ;;  %p2259_p5 = scmp.lt.s32.totalorder %s2251_s12, %s2251_s12 }
 0xaa1   : > { %p2253_p1 = pnand %p2252_p0, %p2770_p7  ;;  %p2260_p6 = por %p2259_p5, %p2258_p4 }
 0xaa3   : > { %p2254_p2 = pneg %p2253_p1 }
 0xaa5   : > { %p2261_p9 = pnand %p2260_p6, %p2254_p2 }
 0xaa7   : > { %2264 = shalt.err (!%p2261_p9)
}
 0xaa8   : > { %s2875_s6 = sld [smem:[#allocation39_spill]] }
 0xaae   : > { %s2265_s14 = scalar_lea.hbm %s2875_s6, 32 }
 0xaaf   : > { %p2266_p11 = scmp.ne.s32.totalorder %s2875_s6, %s2265_s14  ;;  %p2271_p13 = scmp.lt.u32.totalorder %s2265_s14, %s2875_s6 }
 0xab1   : > { %p2267_p12 = pnand %p2266_p11, %p2770_p7 }
 0xab3   : > { %p2268_p10 = pneg %p2267_p12 }
 0xab5   : > { %p2273_p8 = pnand %p2271_p13, %p2268_p10 }
 0xab7   : > { %2276 = shalt.err (!%p2273_p8)
}
 0xab8   : > { %1916 = dma.vmem_to_hbm [thread:$0]  (%p2770_p7), %s1574_s9, 32, %s2875_s6, [#allocation9]  }
 0xab9   : > { %2314 = dma.done.wait (%p2770_p7), [#allocation9], 32  }
 0xaba   : > { %2316 = vsyncadd (%p2770_p7), [#allocation9], 4294967264 }
 0xabb PF: > { %s34_s0 = sadd.s32 1, %s2335_s0   ;;  %s2876_s10 = sld [smem:[#allocation26_spill]] }
 0xabc   : > { %p31_p3 = scmp.ge.s32.totalorder %s34_s0, 4   ;;  %s2877_s13 = sld [smem:[#allocation25_spill]] }
 0xabd   : > { %s2878_s26 = smov %s2323_s27  ;;  %s2880_s28 = smov %s2331_s29 }
 0xabe   :  { %33 = sbr.rel (!%p31_p3) target bundleno = 21 (0x15), region = 196 }
 0xac1   : > { %s2879_s27 = smov %s2876_s10 }
 0xac2   : > { %s2881_s29 = smov %s2877_s13 }
 0xac5   :  { %1586 = vsyncpa [#allocation8], 1 }
 0xac6   :  { %1588 = vsyncpa [#allocation8 + $0x1], 1 }
 0xac7   :  { %1589 = vsyncpa [#allocation11], 1 }
 0xac8   :  { %1590 = vsyncpa [#allocation14], 1 }
 0xac9   :  { %1591 = vsyncpa [#allocation17], 1 }
 0xaca   :  { %1592 = vsyncpa [#allocation9], 1 }
 0xacb   :  { %1594 = vsyncpa [#allocation9 + $0x1], 1 }

</bundles_post_ra>
